<compile_context>
chip_gen: v5e
topology: v5e:2x2
jax: 0.10.0
libtpu: 0.0.40
codegen_flags: <defaults>
</compile_context>

<pallas_src>
import functools

import numpy as np
import jax
import jax.numpy as jnp
from jax import lax
from jax.experimental import pallas as pl
from jax.experimental.pallas import tpu as pltpu


def _round_up(x, m):
    return (x + m - 1) // m * m


def _vmem_capacity_bytes():
    """Physical per-core VMEM, with a conservative fallback (v7x = 64 MiB/TC)."""
    try:
        get_info = getattr(pltpu, "get_tpu_info", None)
        if get_info is not None:
            cap = getattr(get_info(), "vmem_capacity_bytes", None)
            if cap:
                return int(cap)
    except Exception:
        pass
    return 64 * 2**20


# --------------------------------------------------------------------------
# Path A: im2col matmul (small channel counts -- the TripletAttention case)
# --------------------------------------------------------------------------

def _im2col_kernel(p_ref, w_ref, b_ref, o_ref):
    # p_ref: (TM, CKp) bf16   im2col patches
    # w_ref: (CKp, TCout) bf16  folded weights
    # b_ref: (1, TCout) f32     folded BN bias
    # o_ref: (TM, TCout) bf16
    acc = jnp.dot(p_ref[...], w_ref[...], preferred_element_type=jnp.float32)
    y = acc + b_ref[...]
    y = y * (1.0 / (1.0 + jnp.exp(-y)))          # SiLU in f32
    o_ref[...] = y.astype(o_ref.dtype)


def _conv_im2col_nhwc(x_nhwc, w_folded, bias, *, k, tile_m, tile_cout, out_dtype):
    n, h, w, c1 = x_nhwc.shape
    c2 = w_folded.shape[-1]
    pad = k // 2

    ck = k * k * c1
    ck_p = _round_up(ck, 128)
    cout_p = _round_up(c2, 128)
    tcout = min(cout_p, _round_up(tile_cout, 128))
    while cout_p % tcout:
        tcout -= 128

    # im2col lift: patch row order (kh, kw, c) matches w_folded.reshape(k*k*c1, c2).
    xp = jnp.pad(x_nhwc, ((0, 0), (pad, pad), (pad, pad), (0, 0)))
    cols = [xp[:, kh:kh + h, kw:kw + w, :] for kh in range(k) for kw in range(k)]
    patches = jnp.concatenate(cols, axis=-1).reshape(n * h * w, ck)

    m = n * h * w
    tm = max(8, (min(tile_m, _round_up(m, 8)) // 8) * 8)
    m_pad = _round_up(m, tm)
    patches = jnp.pad(patches, ((0, m_pad - m), (0, ck_p - ck))).astype(jnp.bfloat16)

    w_mat = jnp.pad(w_folded.reshape(ck, c2),
                    ((0, ck_p - ck), (0, cout_p - c2))).astype(jnp.bfloat16)
    b_p = jnp.pad(bias, (0, cout_p - c2)).reshape(1, cout_p).astype(jnp.float32)

    cap = _vmem_capacity_bytes()
    need = 2 * (tm * ck_p * 2 + ck_p * tcout * 2 + tm * tcout * 2 + tcout * 4)
    vmem_limit = int(min(cap * 0.8, max(32 * 2**20, 2 * need)))

    out = pl.pallas_call(
        _im2col_kernel,
        out_shape=jax.ShapeDtypeStruct((m_pad, cout_p), jnp.bfloat16),
        grid_spec=pltpu.PrefetchScalarGridSpec(
            num_scalar_prefetch=0,
            grid=(m_pad // tm, cout_p // tcout),
            in_specs=[pl.BlockSpec((tm, ck_p), lambda i, j: (i, 0)),
                      pl.BlockSpec((ck_p, tcout), lambda i, j: (0, j)),
                      pl.BlockSpec((1, tcout), lambda i, j: (0, j))],
            out_specs=pl.BlockSpec((tm, tcout), lambda i, j: (i, j)),
        ),
        compiler_params=pltpu.CompilerParams(
            dimension_semantics=("parallel", "parallel"),
            vmem_limit_bytes=vmem_limit,
        ),
    )(patches, w_mat, b_p)

    out = out[:m, :c2].reshape(n, h, w, c2)
    return out.astype(out_dtype)


# --------------------------------------------------------------------------
# Path B: direct halo-tiled conv (wide channels)
# --------------------------------------------------------------------------

def _sub_tile_h(th, w8):
    """Largest divisor of TH whose M-chunk (hs*W8) stays register-friendly."""
    target = max(1, 256 // w8)
    hs = 1
    for d in range(1, th + 1):
        if th % d == 0 and d <= target:
            hs = d
    return hs


def _direct_vmem_bytes(th, w8, wp, k, cinp, tcout):
    """Rough footprint: double-buffered blocks + xtile scratch (bytes)."""
    in_tile = th * wp * cinp * 2                      # bf16 main rows
    halo = (k - 1) * wp * cinp * 2                    # bf16 halo rows
    out_tile = th * w8 * tcout * 2                    # bf16 output tile
    wts = k * k * cinp * tcout * 2
    bias = tcout * 4
    xtile = (th + k - 1) * wp * cinp * 2
    return 2 * (in_tile + halo + out_tile + wts + bias) + xtile


def _pick_tile_h(h, w8, wp, k, cinp, tcout, budget):
    best = None
    for th in range(1, h + 1):
        if h % th:
            continue
        if th * w8 > 2048:                            # cap register accumulator / unroll
            continue
        hs = _sub_tile_h(th, w8)
        if (th // hs) * k * k > 128:                  # cap unrolled dot count
            continue
        if _direct_vmem_bytes(th, w8, wp, k, cinp, tcout) > budget:
            continue
        best = th
    return best if best is not None else 1


def _make_direct_kernel(*, K, TH, HS, W8, has_halo):
    n_chunks = TH // HS

    def kernel(*refs):
        if has_halo:
            x_ref, halo_ref, w_ref, b_ref, o_ref, xtile_ref = refs
        else:
            x_ref, w_ref, b_ref, o_ref, xtile_ref = refs
        # x_ref:     (1, TH, Wp, Cinp)       bf16
        # halo_ref:  (1, 1, K-1, Wp, Cinp)   bf16
        # w_ref:     (K, K, Cinp, TCout)     bf16 (BN-scale folded)
        # b_ref:     (1, TCout)              f32
        # o_ref:     (1, TH, W8, TCout)      bf16
        # xtile_ref: (TH+K-1, Wp, Cinp)      bf16 scratch
        cinp = x_ref.shape[-1]
        tcout = o_ref.shape[-1]

        # Assemble the input tile once per (batch, H-tile).  The Cout-tile axis is
        # innermost and "arbitrary", so the x block index (and this scratch) is
        # unchanged across co steps -- no per-co VMEM->VMEM copy.
        @pl.when(pl.program_id(1) == 0)
        def _():
            xtile_ref[0:TH] = x_ref[0]
            if has_halo:
                xtile_ref[TH:TH + K - 1] = halo_ref[0, 0]

        bias = b_ref[...]                                     # (1, TCout) f32
        for c in range(n_chunks):
            r0 = c * HS
            acc = None
            for kh in range(K):
                for kw in range(K):
                    patch = xtile_ref[r0 + kh:r0 + kh + HS, kw:kw + W8, :]
                    lhs = patch.reshape(HS * W8, cinp)        # layout-compatible (W8 % 8 == 0)
                    contrib = jnp.dot(lhs, w_ref[kh, kw],
                                      preferred_element_type=jnp.float32)
                    acc = contrib if acc is None else acc + contrib
            y = acc + bias
            y = y * (1.0 / (1.0 + jnp.exp(-y)))               # SiLU
            o_ref[0, r0:r0 + HS] = y.reshape(HS, W8, tcout).astype(o_ref.dtype)

    return kernel


def _conv_direct_nhwc(x_nhwc, w_folded, bias, *, k, tile_h, tile_cout, out_dtype):
    n, h, w, c1 = x_nhwc.shape
    c2 = w_folded.shape[-1]
    pad = k // 2

    cinp = _round_up(c1, 128)
    cout_p = _round_up(c2, 128)
    tcout = min(cout_p, _round_up(tile_cout, 128))
    while cout_p % tcout:
        tcout -= 128
    n_co = cout_p // tcout

    w8 = _round_up(w, 8)                                      # keep stores lane-dense
    wp_ = w8 + 2 * pad

    x_pad = jnp.pad(x_nhwc, ((0, 0), (pad, pad), (pad, pad + (w8 - w)),
                             (0, cinp - c1))).astype(jnp.bfloat16)
    w_p = jnp.pad(w_folded, ((0, 0), (0, 0), (0, cinp - c1),
                             (0, cout_p - c2))).astype(jnp.bfloat16)
    b_p = jnp.pad(bias, (0, cout_p - c2)).reshape(1, cout_p).astype(jnp.float32)

    cap = _vmem_capacity_bytes()
    budget = max(16 * 2**20, int(cap * 0.35))                 # generation-aware
    if tile_h is None:
        tile_h = _pick_tile_h(h, w8, wp_, k, cinp, tcout, budget)
    if h % tile_h:
        raise ValueError(f"tile_h={tile_h} must divide H={h}")
    n_ht = h // tile_h
    hs = _sub_tile_h(tile_h, w8)

    has_halo = k > 1
    inputs = [x_pad]
    in_specs = [pl.BlockSpec((1, tile_h, wp_, cinp),
                             lambda bt, co: (bt // n_ht, bt % n_ht, 0, 0))]
    if has_halo:
        # Bottom K-1 halo rows of every H-tile (tiny gather in the wrapper).
        row_idx = (np.arange(n_ht)[:, None] + 1) * tile_h + np.arange(k - 1)[None, :]
        halo = x_pad[:, row_idx]                              # (N, n_ht, K-1, Wp, Cinp)
        inputs.append(halo)
        in_specs.append(pl.BlockSpec((1, 1, k - 1, wp_, cinp),
                                     lambda bt, co: (bt // n_ht, bt % n_ht, 0, 0, 0)))
    inputs += [w_p, b_p]
    in_specs += [pl.BlockSpec((k, k, cinp, tcout), lambda bt, co: (0, 0, 0, co)),
                 pl.BlockSpec((1, tcout), lambda bt, co: (0, co))]

    need = _direct_vmem_bytes(tile_h, w8, wp_, k, cinp, tcout)
    vmem_limit = int(min(cap * 0.8, max(32 * 2**20, int(1.5 * need))))

    kernel = _make_direct_kernel(K=k, TH=tile_h, HS=hs, W8=w8, has_halo=has_halo)

    out = pl.pallas_call(
        kernel,
        out_shape=jax.ShapeDtypeStruct((n, h, w8, cout_p), jnp.bfloat16),
        grid_spec=pltpu.PrefetchScalarGridSpec(
            num_scalar_prefetch=0,
            grid=(n * n_ht, n_co),
            in_specs=in_specs,
            out_specs=pl.BlockSpec((1, tile_h, w8, tcout),
                                   lambda bt, co: (bt // n_ht, bt % n_ht, 0, co)),
            scratch_shapes=[pltpu.VMEM((tile_h + k - 1, wp_, cinp), jnp.bfloat16)],
        ),
        compiler_params=pltpu.CompilerParams(
            # co axis must stay sequential (innermost, not megacore-sharded)
            # because the xtile scratch is assembled only at co == 0.
            dimension_semantics=("parallel", "arbitrary"),
            vmem_limit_bytes=vmem_limit,
        ),
    )(*inputs)

    return out[:, :, :w, :c2].astype(out_dtype)


# --------------------------------------------------------------------------
# Public wrappers
# --------------------------------------------------------------------------

def conv_bn_silu_nhwc(x_nhwc, w_hwio, gamma, beta, running_mean, running_var,
                      *, eps=1e-5, tile_h=None, tile_cout=128, tile_m=512,
                      out_dtype=None):
    """y = SiLU(BN(conv2d(x))), stride 1, pad k//2; NHWC in / NHWC out."""
    k = w_hwio.shape[0]
    if w_hwio.shape[1] != k or k % 2 != 1:
        raise NotImplementedError("only square, odd kernel sizes supported")
    out_dtype = out_dtype if out_dtype is not None else x_nhwc.dtype
    c1 = x_nhwc.shape[-1]

    # Fold BatchNorm (eval) into the conv weights / a single bias.
    scale = gamma / jnp.sqrt(running_var + eps)
    bias = beta - running_mean * scale
    w_folded = w_hwio * scale[None, None, None, :]

    if c1 < 64:
        return _conv_im2col_nhwc(x_nhwc, w_folded, bias, k=k, tile_m=tile_m,
                                 tile_cout=tile_cout, out_dtype=out_dtype)
    return _conv_direct_nhwc(x_nhwc, w_folded, bias, k=k, tile_h=tile_h,
                             tile_cout=tile_cout, out_dtype=out_dtype)


@functools.partial(jax.jit,
                   static_argnames=("eps", "tile_h", "tile_cout", "tile_m"))
def conv_bn_silu(x_nchw, weight, gamma, beta, running_mean, running_var,
                 *, eps=1e-5, tile_h=None, tile_cout=128, tile_m=512):
    """PyTorch-layout entry: x (N,C1,H,W), weight (C2,C1,k,k) -> (N,C2,H,W).

    Layout glue (transpose/pad/crop) is jitted with the kernel; use
    conv_bn_silu_nhwc directly to stay NHWC and avoid the extra passes.
    """
    x_nhwc = jnp.transpose(x_nchw, (0, 2, 3, 1))
    w_hwio = jnp.transpose(weight, (2, 3, 1, 0))
    y = conv_bn_silu_nhwc(x_nhwc, w_hwio, gamma, beta, running_mean, running_var,
                          eps=eps, tile_h=tile_h, tile_cout=tile_cout,
                          tile_m=tile_m, out_dtype=x_nchw.dtype)
    return jnp.transpose(y, (0, 3, 1, 2))


def _reference(x_nchw, weight, gamma, beta, running_mean, running_var, *, eps=1e-5):
    """Pure-JAX reference using the same folded-weight bf16 quantization."""
    k = weight.shape[-1]
    pad = k // 2
    scale = gamma / jnp.sqrt(running_var + eps)
    bias = beta - running_mean * scale
    w_hwio = jnp.transpose(weight, (2, 3, 1, 0)) * scale[None, None, None, :]
    x_nhwc = jnp.transpose(x_nchw, (0, 2, 3, 1)).astype(jnp.bfloat16)
    y = lax.conv_general_dilated(
        x_nhwc, w_hwio.astype(jnp.bfloat16),
        window_strides=(1, 1), padding=((pad, pad), (pad, pad)),
        dimension_numbers=("NHWC", "HWIO", "NHWC"),
        preferred_element_type=jnp.float32)
    y = y + bias[None, None, None, :]
    y = y * jax.nn.sigmoid(y)
    return jnp.transpose(y, (0, 3, 1, 2))


# --------------------------------------------------------------------------
# Self-test
# --------------------------------------------------------------------------

if __name__ == "__main__":
    root_key = jax.random.PRNGKey(0)

    def run_case(case, n, c1, c2, h, w, k, **kw):
        key = jax.random.fold_in(root_key, case)
        k_x, k_w, k_g, k_b, k_m, k_v = jax.random.split(key, 6)
        x = jax.random.normal(k_x, (n, c1, h, w), dtype=jnp.float32)
        weight = jax.random.normal(k_w, (c2, c1, k, k), dtype=jnp.float32) * 0.1
        gamma = 1.0 + 0.1 * jax.random.normal(k_g, (c2,), dtype=jnp.float32)
        beta = 0.1 * jax.random.normal(k_b, (c2,), dtype=jnp.float32)
        rmean = 0.1 * jax.random.normal(k_m, (c2,), dtype=jnp.float32)
        rvar = jnp.abs(1.0 + 0.1 * jax.random.normal(k_v, (c2,), dtype=jnp.float32))

        out = conv_bn_silu(x, weight, gamma, beta, rmean, rvar, **kw)
        out = jax.block_until_ready(out)
        ref = _reference(x, weight, gamma, beta, rmean, rvar)
        assert out.shape == (n, c2, h, w), (out.shape, (n, c2, h, w))
        err = jnp.max(jnp.abs(out - ref))
        assert jnp.allclose(out, ref, atol=1e-2, rtol=2e-2), (
            f"case {case}: mismatch vs reference, max abs err = {err}")

    # 1) tiny-channel conv (im2col path), k=3
    run_case(1, 2, 4, 8, 16, 16, 3)
    # 2) the actual TripletAttention Conv config: c1=2, c2=1, k=7 (im2col path)
    run_case(2, 2, 2, 1, 16, 16, 7)
    # 3) wide-channel conv (direct halo-tiled path): 2 H-tiles x 2 Cout-tiles,
    #    exercising the halo gather and the co==0 scratch-assembly guard.
    run_case(3, 1, 64, 256, 16, 16, 3, tile_h=8, tile_cout=128)

    print("KERNEL_OK")
</pallas_src>

<mosaic_0001>
module attributes {stable_mosaic.version = 11 : i64} {
  func.func @_im2col_kernel(%arg0: i32, %arg1: i32, %arg2: memref<512x128xbf16, #tpu.memory_space<vmem>>, %arg3: memref<128x128xbf16, #tpu.memory_space<vmem>>, %arg4: memref<1x128xf32, #tpu.memory_space<vmem>>, %arg5: memref<512x128xbf16, #tpu.memory_space<vmem>>) attributes {dimension_semantics = [#tpu.dimension_semantics<parallel>, #tpu.dimension_semantics<parallel>], iteration_bounds = array<i64: 1, 1>, scalar_prefetch = 0 : i64, scratch_operands = 0 : i64, tpu.core_type = #tpu.core_type<tc>, window_params = [{transform_indices = @transform_0, window_bounds = array<i64: 512, 128>}, {transform_indices = @transform_1, window_bounds = array<i64: 128, 128>}, {transform_indices = @transform_2, window_bounds = array<i64: 1, 128>}, {transform_indices = @transform_3, window_bounds = array<i64: 512, 128>}]} {
    %c0 = arith.constant 0 : index
    %c0_0 = arith.constant 0 : index
    %0 = vector.load %arg2[%c0, %c0_0] : memref<512x128xbf16, #tpu.memory_space<vmem>>, vector<512x128xbf16>
    %c0_1 = arith.constant 0 : index
    %c0_2 = arith.constant 0 : index
    %1 = vector.load %arg3[%c0_1, %c0_2] : memref<128x128xbf16, #tpu.memory_space<vmem>>, vector<128x128xbf16>
    %cst = arith.constant dense<0.000000e+00> : vector<512x128xf32>
    %2 = tpu.matmul %0, %1, %cst {dimension_numbers = #tpu.dot_dimension_numbers<[1], [0], [0], [1], [0, 0, 1, 1], [], []>} : vector<512x128xbf16>, vector<128x128xbf16>, vector<512x128xf32> -> vector<512x128xf32>
    %c0_3 = arith.constant 0 : index
    %c0_4 = arith.constant 0 : index
    %3 = vector.load %arg4[%c0_3, %c0_4] : memref<1x128xf32, #tpu.memory_space<vmem>>, vector<1x128xf32>
    %4 = vector.broadcast %3 : vector<1x128xf32> to vector<512x128xf32>
    %5 = arith.addf %2, %4 : vector<512x128xf32>
    %cst_5 = arith.constant 0.000000e+00 : f32
    %6 = vector.broadcast %cst_5 : f32 to vector<512x128xf32>
    %7 = arith.subf %6, %5 : vector<512x128xf32>
    %8 = math.exp %7 : vector<512x128xf32>
    %cst_6 = arith.constant 1.000000e+00 : f32
    %9 = vector.broadcast %cst_6 : f32 to vector<512x128xf32>
    %10 = arith.addf %9, %8 : vector<512x128xf32>
    %cst_7 = arith.constant 1.000000e+00 : f32
    %11 = vector.broadcast %cst_7 : f32 to vector<512x128xf32>
    %12 = arith.divf %11, %10 : vector<512x128xf32>
    %13 = arith.mulf %5, %12 : vector<512x128xf32>
    %14 = arith.truncf %13 : vector<512x128xf32> to vector<512x128xbf16>
    %c0_8 = arith.constant 0 : index
    %c0_9 = arith.constant 0 : index
    %15 = vector.load %arg5[%c0_8, %c0_9] : memref<512x128xbf16, #tpu.memory_space<vmem>>, vector<512x128xbf16>
    tpu.vector_store %arg5[%c0_8, %c0_9], %14 {strides = array<i32>} : memref<512x128xbf16, #tpu.memory_space<vmem>>, vector<512x128xbf16>,
    return
  }
  func.func @transform_0(%arg0: i32, %arg1: i32) -> (i32, i32) {
    %c0_i32 = arith.constant 0 : i32
    %c0_i32_0 = arith.constant 0 : i32
    return %arg0, %c0_i32 : i32, i32
  }
  func.func @transform_1(%arg0: i32, %arg1: i32) -> (i32, i32) {
    %c0_i32 = arith.constant 0 : i32
    %c0_i32_0 = arith.constant 0 : i32
    return %c0_i32, %arg1 : i32, i32
  }
  func.func @transform_2(%arg0: i32, %arg1: i32) -> (i32, i32) {
    %c0_i32 = arith.constant 0 : i32
    %c0_i32_0 = arith.constant 0 : i32
    return %c0_i32, %arg1 : i32, i32
  }
  func.func @transform_3(%arg0: i32, %arg1: i32) -> (i32, i32) {
    %c0_i32 = arith.constant 0 : i32
    return %arg0, %arg1 : i32, i32
  }
}

</mosaic_0001>

<bundles_post_ra>
// kernel: conv_bn_silu.1
= control target key start
LH: loop header
LB: loop body
LE: loop exit
PB: predicated region body
PF: predicated region fallthrough
CT: control target
= control target key end

     0   :  { %s4532_s1 = inlined_call_operand.vmem [shape: bf16[128,128], index: 1, kind: input, shape index: {}]   ;;  %s4533_s2 = inlined_call_operand.vmem [shape: f32[1,128], index: 2, kind: input, shape index: {}]   ;;  %s4534_s0 = inlined_call_operand.vmem [shape: bf16[512,128], index: 0, kind: input, shape index: {}]   ;;  %s4535_s3 = inlined_call_operand.vmem [shape: bf16[512,128], index: 3, kind: output, shape index: {}]  }
   0x1   :  { %v2118_v0 = vld [vmem:[%s4532_s1 + $0x38] sm:$0xff]  ;;  %v2117_v1 = vld [vmem:[%s4532_s1 + $0x30] sm:$0xff]  ;;  %v2116_v2 = vld [vmem:[%s4532_s1 + $0x28] sm:$0xff] }
   0x2   :  { %338 = vmatpush.bf16.msra.mxu0 %v2118_v0  ;;  %2310 = vmatpush.bf16.msra.mxu1 %v2118_v0  ;;  %v2115_v3 = vld [vmem:[%s4532_s1 + $0x20] sm:$0xff]  ;;  %v2114_v4 = vld [vmem:[%s4532_s1 + $0x18] sm:$0xff]  ;;  %v2113_v5 = vld [vmem:[%s4532_s1 + $0x10] sm:$0xff] }
   0x3   :  { %2311 = vmatpush.bf16.msra.mxu2 %v2118_v0  ;;  %2312 = vmatpush.bf16.msra.mxu3 %v2118_v0  ;;  %v2112_v6 = vld [vmem:[%s4532_s1 + $0x8] sm:$0xff]  ;;  %v2111_v7 = vld [vmem:[%s4532_s1] sm:$0xff]  ;;  %v2081_v16 = vld [vmem:[%s4534_s0 + $0x10] sm:$0xff] }
   0x4   :  { %v2079_v8 = vld [vmem:[%s4534_s0] sm:$0xff]  ;;  %v2080_v12 = vld [vmem:[%s4534_s0 + $0x8] sm:$0xff]  ;;  %v2089_v17 = vld [vmem:[%s4534_s0 + $0x50] sm:$0xff] }
   0x5   :  { %v2087_v9 = vld [vmem:[%s4534_s0 + $0x40] sm:$0xff]  ;;  %v2088_v13 = vld [vmem:[%s4534_s0 + $0x48] sm:$0xff]  ;;  %v2097_v18 = vld [vmem:[%s4534_s0 + $0x90] sm:$0xff] }
   0x6   :  { %339 = vmatpush.bf16.msra.mxu0 %v2117_v1  ;;  %2313 = vmatpush.bf16.msra.mxu1 %v2117_v1  ;;  %v2095_v10 = vld [vmem:[%s4534_s0 + $0x80] sm:$0xff]  ;;  %v2096_v14 = vld [vmem:[%s4534_s0 + $0x88] sm:$0xff]  ;;  %v2105_v19 = vld [vmem:[%s4534_s0 + $0xd0] sm:$0xff] }
   0x7   :  { %2314 = vmatpush.bf16.msra.mxu2 %v2117_v1  ;;  %2315 = vmatpush.bf16.msra.mxu3 %v2117_v1  ;;  %v2103_v11 = vld [vmem:[%s4534_s0 + $0xc0] sm:$0xff]  ;;  %v2104_v15 = vld [vmem:[%s4534_s0 + $0xc8] sm:$0xff]  ;;  %v2082_v20 = vld [vmem:[%s4534_s0 + $0x18] sm:$0xff] }
   0x8   :  { %v2090_v21 = vld [vmem:[%s4534_s0 + $0x58] sm:$0xff]  ;;  %v2083_v24 = vld [vmem:[%s4534_s0 + $0x20] sm:$0xff]  ;;  %v2084_v28 = vld [vmem:[%s4534_s0 + $0x28] sm:$0xff] }
   0x9   :  { %v2098_v22 = vld [vmem:[%s4534_s0 + $0x98] sm:$0xff]  ;;  %v2091_v25 = vld [vmem:[%s4534_s0 + $0x60] sm:$0xff]  ;;  %v2092_v29 = vld [vmem:[%s4534_s0 + $0x68] sm:$0xff] }
   0xa   :  { %340 = vmatpush.bf16.msra.mxu0 %v2116_v2  ;;  %2316 = vmatpush.bf16.msra.mxu1 %v2116_v2  ;;  %v2106_v23 = vld [vmem:[%s4534_s0 + $0xd8] sm:$0xff]  ;;  %v2099_v26 = vld [vmem:[%s4534_s0 + $0xa0] sm:$0xff]  ;;  %v2100_v30 = vld [vmem:[%s4534_s0 + $0xa8] sm:$0xff] }
   0xb   :  { %2317 = vmatpush.bf16.msra.mxu2 %v2116_v2  ;;  %2318 = vmatpush.bf16.msra.mxu3 %v2116_v2  ;;  %v2107_v27 = vld [vmem:[%s4534_s0 + $0xe0] sm:$0xff]  ;;  %v2108_v31 = vld [vmem:[%s4534_s0 + $0xe8] sm:$0xff]  ;;  %v2085_v32 = vld [vmem:[%s4534_s0 + $0x30] sm:$0xff] }
   0xc   :  { %v2093_v33 = vld [vmem:[%s4534_s0 + $0x70] sm:$0xff]  ;;  %v2086_v36 = vld [vmem:[%s4534_s0 + $0x38] sm:$0xff]  ;;  %v2736_v40 = vld [vmem:[%s4533_s2] ss:$0 sm:$0xff] }
   0xd   :  { %v2101_v34 = vld [vmem:[%s4534_s0 + $0xb0] sm:$0xff]  ;;  %v2094_v37 = vld [vmem:[%s4534_s0 + $0x78] sm:$0xff] }
   0xe   :  { %341 = vmatpush.bf16.msra.mxu0 %v2115_v3  ;;  %2319 = vmatpush.bf16.msra.mxu1 %v2115_v3  ;;  %v2109_v35 = vld [vmem:[%s4534_s0 + $0xf0] sm:$0xff]  ;;  %v2102_v38 = vld [vmem:[%s4534_s0 + $0xb8] sm:$0xff] }
   0xf   :  { %2320 = vmatpush.bf16.msra.mxu2 %v2115_v3  ;;  %2321 = vmatpush.bf16.msra.mxu3 %v2115_v3  ;;  %v2110_v39 = vld [vmem:[%s4534_s0 + $0xf8] sm:$0xff] }
  0x12   :  { %342 = vmatpush.bf16.msra.mxu0 %v2114_v4  ;;  %2322 = vmatpush.bf16.msra.mxu1 %v2114_v4 }
  0x13   :  { %2323 = vmatpush.bf16.msra.mxu2 %v2114_v4  ;;  %2324 = vmatpush.bf16.msra.mxu3 %v2114_v4 }
  0x16   :  { %343 = vmatpush.bf16.msra.mxu0 %v2113_v5  ;;  %2325 = vmatpush.bf16.msra.mxu1 %v2113_v5 }
  0x17   :  { %2326 = vmatpush.bf16.msra.mxu2 %v2113_v5  ;;  %2327 = vmatpush.bf16.msra.mxu3 %v2113_v5 }
  0x1a   :  { %344 = vmatpush.bf16.msra.mxu0 %v2112_v6  ;;  %2328 = vmatpush.bf16.msra.mxu1 %v2112_v6 }
  0x1b   :  { %2329 = vmatpush.bf16.msra.mxu2 %v2112_v6  ;;  %2330 = vmatpush.bf16.msra.mxu3 %v2112_v6 }
  0x1e   :  { %345 = vmatpush.bf16.msra.mxu0 %v2111_v7  ;;  %2331 = vmatpush.bf16.msra.mxu1 %v2111_v7 }
  0x1f   :  { %2332 = vmatpush.bf16.msra.mxu2 %v2111_v7  ;;  %2333 = vmatpush.bf16.msra.mxu3 %v2111_v7 }
  0x21   :  { %346 = vmatmul.bf16.vlgmr.msra.gmra.mxu0 %v2079_v8  ;;  %386 = vmatmul.bf16.vlgmr.msra.gmra.mxu1 %v2087_v9 }
  0x22   :  { %426 = vmatmul.bf16.vlgmr.msra.gmra.mxu2 %v2095_v10  ;;  %466 = vmatmul.bf16.vlgmr.msra.gmra.mxu3 %v2103_v11 }
  0x31   :  { %351 = vmatmul.bf16.gmra.mxu0 %v2080_v12  ;;  %391 = vmatmul.bf16.gmra.mxu1 %v2088_v13 }
  0x32   :  { %431 = vmatmul.bf16.gmra.mxu2 %v2096_v14  ;;  %471 = vmatmul.bf16.gmra.mxu3 %v2104_v15 }
  0x41   :  { %356 = vmatmul.bf16.gmra.mxu0 %v2081_v16  ;;  %396 = vmatmul.bf16.gmra.mxu1 %v2089_v17 }
  0x42   :  { %436 = vmatmul.bf16.gmra.mxu2 %v2097_v18  ;;  %476 = vmatmul.bf16.gmra.mxu3 %v2105_v19 }
  0x51   :  { %361 = vmatmul.bf16.gmra.mxu0 %v2082_v20  ;;  %401 = vmatmul.bf16.gmra.mxu1 %v2090_v21 }
  0x52   :  { %441 = vmatmul.bf16.gmra.mxu2 %v2098_v22  ;;  %481 = vmatmul.bf16.gmra.mxu3 %v2106_v23 }
  0x61   :  { %366 = vmatmul.bf16.gmra.mxu0 %v2083_v24  ;;  %406 = vmatmul.bf16.gmra.mxu1 %v2091_v25 }
  0x62   :  { %446 = vmatmul.bf16.gmra.mxu2 %v2099_v26  ;;  %486 = vmatmul.bf16.gmra.mxu3 %v2107_v27 }
  0x71   :  { %371 = vmatmul.bf16.gmra.mxu0 %v2084_v28  ;;  %411 = vmatmul.bf16.gmra.mxu1 %v2092_v29 }
  0x72   :  { %451 = vmatmul.bf16.gmra.mxu2 %v2100_v30  ;;  %491 = vmatmul.bf16.gmra.mxu3 %v2108_v31 }
  0x81   :  { %376 = vmatmul.bf16.gmra.mxu0 %v2085_v32  ;;  %416 = vmatmul.bf16.gmra.mxu1 %v2093_v33 }
  0x82   :  { %456 = vmatmul.bf16.gmra.mxu2 %v2101_v34  ;;  %496 = vmatmul.bf16.gmra.mxu3 %v2109_v35 }
  0x91   :  { %381 = vmatmul.bf16.gmra.mxu0 %v2086_v36  ;;  %421 = vmatmul.bf16.gmra.mxu1 %v2094_v37 }
  0x92   :  { %461 = vmatmul.bf16.gmra.mxu2 %v2102_v38  ;;  %501 = vmatmul.bf16.gmra.mxu3 %v2110_v39 }
  0x9e   :  { %v347_v41 = vpop.f32.mrf.mxu0  ;;  %v387_v42 = vpop.f32.mrf.mxu1 }
  0x9f   :  { %v2739_v43 = vadd.f32 %v2736_v40, %v347_v41  ;;  %v2742_v44 = vadd.f32 %v2736_v40, %v387_v42 }
  0xa1   :  { %v507_v45 = vsub.f32 0.0, %v2739_v43  ;;  %v523_v46 = vsub.f32 0.0, %v2742_v44 }
  0xa3   :  { %v571_v47 = vmul.f32 1.442695, %v507_v45  ;;  %v603_v48 = vmul.f32 1.442695, %v523_v46 }
  0xa5   :  { %2335 = vpow2.f32 %v571_v47  ;;  %v427_v49 = vpop.f32.mrf.mxu2  ;;  %v467_v50 = vpop.f32.mrf.mxu3 }
  0xa6   :  { %2337 = vpow2.f32 %v603_v48  ;;  %v2747_v51 = vadd.f32 %v2736_v40, %v427_v49  ;;  %v2750_v52 = vadd.f32 %v2736_v40, %v467_v50  ;;  %v349_v53 = vpop.f32.mrf.mxu0  ;;  %v389_v54 = vpop.f32.mrf.mxu1 }
  0xa7   :  { %v2753_v55 = vadd.f32 %v2736_v40, %v349_v53  ;;  %v2756_v56 = vadd.f32 %v2736_v40, %v389_v54 }
  0xa8   :  { %v539_v57 = vsub.f32 0.0, %v2747_v51  ;;  %v555_v58 = vsub.f32 0.0, %v2750_v52 }
  0xa9   :  { %v508_v59 = vsub.f32 0.0, %v2753_v55  ;;  %v524_v60 = vsub.f32 0.0, %v2756_v56 }
  0xaa   :  { %v635_v61 = vmul.f32 1.442695, %v539_v57  ;;  %v667_v62 = vmul.f32 1.442695, %v555_v58 }
  0xab   :  { %v2336_v63 = vpop.eup %2335  ;;  %v573_v2 = vmul.f32 1.442695, %v508_v59  ;;  %v605_v4 = vmul.f32 1.442695, %v524_v60 }
  0xac   :  { %v2338_v0 = vpop.eup %2337  ;;  %v2762_v1 = vadd.f32 1.0, %v2336_v63  ;;  %2339 = vpow2.f32 %v635_v61 }
  0xad   :  { %v2764_v3 = vadd.f32 1.0, %v2338_v0  ;;  %2341 = vpow2.f32 %v667_v62  ;;  %v429_v5 = vpop.f32.mrf.mxu2  ;;  %v469_v9 = vpop.f32.mrf.mxu3 }
  0xae   :  { %2343 = vrcp.f32 %v2762_v1  ;;  %v2769_v6 = vadd.f32 %v2736_v40, %v429_v5  ;;  %v774_v13 = vand.u32 2147483648, %v2762_v1  ;;  %v772_v17 = vand.u32 2147483647, %v2762_v1  ;;  %v352_v19 = vpop.f32.mrf.mxu0  ;;  %v392_v20 = vpop.f32.mrf.mxu1 }
  0xaf   :  { %2345 = vrcp.f32 %v2764_v3  ;;  %v2786_v18 = vadd.f32 %v2736_v40, %v469_v9  ;;  %vm768_vm0 = vweird.f32 %v2762_v1  ;;  %v1014_v23 = vand.u32 2147483648, %v2764_v3 }
  0xb0   :  { %2347 = vpow2.f32 %v573_v2  ;;  %v540_v8 = vsub.f32 0.0, %v2769_v6  ;;  %vm1008_vm1 = vweird.f32 %v2764_v3  ;;  %v1012_v27 = vand.u32 2147483647, %v2764_v3 }
  0xb1   :  { %2349 = vpow2.f32 %v605_v4  ;;  %v775_v28 = vor.u32 1.1754944e-38, %v774_v13  ;;  %v2796_v30 = vadd.f32 %v2736_v40, %v352_v19  ;;  %v2799_v31 = vadd.f32 %v2736_v40, %v392_v20 }
  0xb2   :  { %v2340_v7 = vpop.eup %2339  ;;  %v637_v24 = vmul.f32 1.442695, %v540_v8  ;;  %vm2802_vm2 = vcmp.eq.f32.partialorder %v772_v17, 8.507059e+37  ;;  %v556_v36 = vsub.f32 0.0, %v2786_v18  ;;  %v1015_v38 = vor.u32 1.1754944e-38, %v1014_v23 }
  0xb3   :  { %v2342_v10 = vpop.eup %2341  ;;  %v2772_v11 = vadd.f32 1.0, %v2340_v7  ;;  %vm2816_vm4 = vcmp.eq.f32.partialorder %v1012_v27, 8.507059e+37  ;;  %v509_v49 = vsub.f32 0.0, %v2796_v30  ;;  %v525_v50 = vsub.f32 0.0, %v2799_v31 }
  0xb4   :  { %v2774_v12 = vpop.eup %2343  ;;  %v2777_v14 = vadd.f32 1.0, %v2342_v10  ;;  %v669_v57 = vmul.f32 1.442695, %v556_v36 }
  0xb5   :  { %v2779_v15 = vpop.eup %2345  ;;  %v764_v16 = vmul.f32 %v2774_v12, %v2762_v1  ;;  %2351 = vrcp.f32 %v2772_v11  ;;  %vm769_vm3 = vweird.f32 %v2774_v12  ;;  %v1254_v45 = vand.u32 2147483648, %v2772_v11 }
  0xb6   :  { %v2348_v21 = vpop.eup %2347  ;;  %v1004_v22 = vmul.f32 %v2779_v15, %v2764_v3  ;;  %2353 = vrcp.f32 %v2777_v14  ;;  %v1494_v46 = vand.u32 2147483648, %v2777_v14  ;;  %v1252_v48 = vand.u32 2147483647, %v2772_v11  ;;  %vm2837_vm6 = vmor %vm768_vm0, %vm769_vm3  ;;  %v354_v58 = vpop.f32.mrf.mxu0 }
  0xb7   :  { %v2350_v25 = vpop.eup %2349  ;;  %v765_v26 = vsub.f32 1.0, %v764_v16  ;;  %v2806_v34 = vadd.f32 1.0, %v2348_v21  ;;  %2355 = vpow2.f32 %v637_v24  ;;  %vm1009_vm5 = vweird.f32 %v2779_v15 }
  0xb8   :  { %v1005_v29 = vsub.f32 1.0, %v1004_v22  ;;  %v2808_v35 = vadd.f32 1.0, %v2350_v25  ;;  %vm1248_vm7 = vweird.f32 %v2772_v11  ;;  %v1255_v63 = vor.u32 1.1754944e-38, %v1254_v45  ;;  %vm2853_vm8 = vmor %vm1008_vm1, %vm1009_vm5 }
  0xb9   :  { %v766_v32 = vmul.f32 %v2774_v12, %v765_v26  ;;  %2357 = vrcp.f32 %v2806_v34  ;;  %v787_v61 = vand.u32 2147483647, %v2806_v34  ;;  %v1492_v0 = vand.u32 2147483647, %v2777_v14  ;;  %v432_v26 = vpop.f32.mrf.mxu2 }
  0xba   :  { %v1006_v37 = vmul.f32 %v2779_v15, %v1005_v29  ;;  %2359 = vrcp.f32 %v2808_v35  ;;  %v2849_v1 = vor.u32 1.1754944e-38, %v1494_v46  ;;  %vm2859_vm10 = vcmp.eq.f32.partialorder %v1252_v48, 8.507059e+37 }
  0xbb   :  { %v2813_v39 = vpop.eup %2351  ;;  %v767_v41 = vadd.f32 %v2774_v12, %v766_v32  ;;  %vm783_vm11 = vweird.f32 %v2806_v34  ;;  %v789_v8 = vand.u32 2147483648, %v2806_v34  ;;  %2361 = vpow2.f32 %v669_v57 }
  0xbc   :  { %v1244_v47 = vmul.f32 %v2813_v39, %v2772_v11  ;;  %v2828_v53 = vpop.eup %2353  ;;  %v1007_v54 = vadd.f32 %v2779_v15, %v1006_v37  ;;  %vm1249_vm9 = vweird.f32 %v2813_v39  ;;  %vm2874_vm12 = vcmp.eq.f32.partialorder %v787_v61, 8.507059e+37 }
  0xbd   :  { %v1484_v60 = vmul.f32 %v2828_v53, %v2777_v14  ;;  %v771_v62 = vsel %vm2837_vm6, %v2774_v12, %v767_v41  ;;  %v2356_v2 = vpop.eup %2355  ;;  %vm1488_vm13 = vweird.f32 %v2777_v14  ;;  %v1029_v21 = vand.u32 2147483648, %v2808_v35  ;;  %vm2891_vm15 = vmor %vm1248_vm7, %vm1249_vm9 }
  0xbe   :  { %v1245_v59 = vsub.f32 1.0, %v1244_v47  ;;  %v1011_v3 = vsel %vm2853_vm8, %v2779_v15, %v1007_v54  ;;  %v2868_v12 = vadd.f32 1.0, %v2356_v2  ;;  %v776_v13 = vsel %vm2802_vm2, %v775_v28, %v771_v62  ;;  %v472_v47 = vpop.f32.mrf.mxu3 }
  0xbf   :  { %v2358_v9 = vpop.eup %2357  ;;  %v1485_v10 = vsub.f32 1.0, %v1484_v60  ;;  %v1027_v15 = vand.u32 2147483647, %v2808_v35  ;;  %v575_v22 = vmul.f32 1.442695, %v509_v49  ;;  %v1016_v23 = vsel %vm2816_vm4, %v1015_v38, %v1011_v3 }
  0xc0   :  { %v1246_v5 = vmul.f32 %v2813_v39, %v1245_v59  ;;  %v779_v17 = vmul.f32 %v2358_v9, %v2806_v34  ;;  %v2360_v20 = vpop.eup %2359  ;;  %2363 = vrcp.f32 %v2868_v12  ;;  %vm1023_vm14 = vweird.f32 %v2808_v35 }
  0xc1   :  { %v1019_v25 = vmul.f32 %v2360_v20, %v2808_v35  ;;  %v1723_v27 = vmul.f32 %v776_v13, %v2739_v43  ;;  %v1486_v29 = vmul.f32 %v2828_v53, %v1485_v10  ;;  %vm1489_vm0 = vweird.f32 %v2828_v53  ;;  %v2362_v37 = vpop.eup %2361  ;;  %v394_v13 = vpop.f32.mrf.mxu1 }
  0xc2   :  { %v1247_v16 = vadd.f32 %v2813_v39, %v1246_v5  ;;  %v780_v24 = vsub.f32 1.0, %v779_v17  ;;  %v790_v32 = vor.u32 1.1754944e-38, %v789_v8  ;;  %vm784_vm1 = vweird.f32 %v2358_v9  ;;  %vm2939_vm8 = vmor %vm1488_vm13, %vm1489_vm0 }
  0xc3   :  { %v1020_v43 = vsub.f32 1.0, %v1019_v25  ;;  %v1739_v38 = vmul.f32 %v1016_v23, %v2742_v44  ;;  %vm2901_vm2 = vcmp.eq.f32.partialorder %v1492_v0, 8.507059e+37  ;;  %vm2905_vm3 = vcmp.eq.f32.partialorder %v1027_v15, 8.507059e+37  ;;  %vm785_vm6 = vmor %vm783_vm11, %vm784_vm1 }
  0xc4   :  { %v1251_v33 = vsel %vm2891_vm15, %v2813_v39, %v1247_v16  ;;  %v781_v36 = vmul.f32 %v2358_v9, %v780_v24  ;;  %v1030_v42 = vor.u32 1.1754944e-38, %v1029_v21  ;;  %2365 = vpow2.f32 %v575_v22  ;;  %v434_v16 = vpop.f32.mrf.mxu2 }
  0xc5   :  { %v1021_v46 = vmul.f32 %v2360_v20, %v1020_v43  ;;  %vm1024_vm4 = vweird.f32 %v2360_v20  ;;  %vm1263_vm5 = vweird.f32 %v2868_v12  ;;  %v2910_v39 = vadd.f32 1.0, %v2362_v37 }
  0xc6   :  { %v782_v45 = vadd.f32 %v2358_v9, %v781_v36  ;;  %v2364_v48 = vpop.eup %2363  ;;  %v1256_v44 = vsel %vm2859_vm10, %v1255_v63, %v1251_v33  ;;  %v1487_v49 = vadd.f32 %v2828_v53, %v1486_v29  ;;  %v607_v54 = vmul.f32 1.442695, %v525_v50  ;;  %vm1025_vm7 = vmor %vm1023_vm14, %vm1024_vm4  ;;  %v474_v33 = vpop.f32.mrf.mxu3 }
  0xc7   :  { %v2921_v57 = vadd.f32 %v2736_v40, %v432_v26  ;;  %v1022_v60 = vadd.f32 %v2360_v20, %v1021_v46  ;;  %v1259_v61 = vmul.f32 %v2364_v48, %v2868_v12  ;;  %v1267_v62 = vand.u32 2147483647, %v2868_v12 }
  0xc8   :  { %v786_v59 = vsel %vm785_vm6, %v2358_v9, %v782_v45  ;;  %v1269_v34 = vand.u32 2147483648, %v2868_v12  ;;  %2367 = vrcp.f32 %v2910_v39  ;;  %v2933_v50 = vadd.f32 %v2736_v40, %v472_v47 }
  0xc9   :  { %v791_v63 = vsel %vm2874_vm12, %v790_v32, %v786_v59  ;;  %v1026_v4 = vsel %vm1025_vm7, %v2360_v20, %v1022_v60  ;;  %v1260_v35 = vsub.f32 1.0, %v1259_v61  ;;  %v2945_v5 = vadd.f32 %v2736_v40, %v354_v58 }
  0xca   :  { %v1724_v2 = vmul.f32 %v791_v63, %v2753_v55  ;;  %v2366_v7 = vpop.eup %2365  ;;  %v1491_v8 = vsel %vm2939_vm8, %v2828_v53, %v1487_v49  ;;  %v1031_v9 = vsel %vm2905_vm3, %v1030_v42, %v1026_v4  ;;  %2369 = vpow2.f32 %v607_v54 }
  0xcb   :  { %v541_v14 = vsub.f32 0.0, %v2921_v57  ;;  %v1740_v10 = vmul.f32 %v1031_v9, %v2756_v56  ;;  %v1261_v55 = vmul.f32 %v2364_v48, %v1260_v35  ;;  %vm1264_vm9 = vweird.f32 %v2364_v48 }
  0xcc   :  { %v2122_v3 = vpack.c.bf16 %v1724_v2, %v1723_v27  ;;  %v1755_v17 = vmul.f32 %v1256_v44, %v2747_v51  ;;  %v2955_v19 = vadd.f32 1.0, %v2366_v7  ;;  %v557_v53 = vsub.f32 0.0, %v2933_v50  ;;  %vm1265_vm10 = vmor %vm1263_vm5, %vm1264_vm9 }
  0xcd   :  { %v639_v20 = vmul.f32 1.442695, %v541_v14  ;;  %v1496_v15 = vsel %vm2901_vm2, %v2849_v1, %v1491_v8  ;;  %v2162_v56 = vpack.c.bf16 %v1740_v10, %v1739_v38  ;;  %v1262_v21 = vadd.f32 %v2364_v48, %v1261_v55 }
  0xce   :  { %2123 = vst [vmem:[%s4535_s3] sm:$0xff] %v2122_v3   ;;  %v510_v22 = vsub.f32 0.0, %v2945_v5  ;;  %v2368_v23 = vpop.eup %2367  ;;  %v1270_v51 = vor.u32 1.1754944e-38, %v1269_v34  ;;  %2371 = vrcp.f32 %v2955_v19  ;;  %v2969_v24 = vadd.f32 %v2736_v40, %v394_v13 }
  0xcf   :  { %v2972_v1 = vadd.f32 %v2736_v40, %v434_v16  ;;  %2286 = vst [vmem:[%s4535_s3 + $0x40] sm:$0xff] %v2162_v56   ;;  %v1266_v25 = vsel %vm1265_vm10, %v2364_v48, %v1262_v21  ;;  %vm1268_vm11 = vcmp.eq.f32.partialorder %v1267_v62, 8.507059e+37  ;;  %v1499_v26 = vmul.f32 %v2368_v23, %v2910_v39 }
  0xd0   :  { %2373 = vpow2.f32 %v639_v20  ;;  %v2370_v12 = vpop.eup %2369  ;;  %v1271_v27 = vsel %vm1268_vm11, %v1270_v51, %v1266_v25  ;;  %v1507_v28 = vand.u32 2147483647, %v2910_v39  ;;  %v1509_v29 = vand.u32 2147483648, %v2910_v39 }
  0xd1   :  { %v671_v32 = vmul.f32 1.442695, %v557_v53  ;;  %v1756_v36 = vmul.f32 %v1271_v27, %v2769_v6  ;;  %v1500_v43 = vsub.f32 1.0, %v1499_v26  ;;  %v2981_v37 = vadd.f32 1.0, %v2370_v12 }
  0xd2   :  { %v577_v38 = vmul.f32 1.442695, %v510_v22  ;;  %vm1504_vm12 = vweird.f32 %v2368_v23  ;;  %v526_v11 = vsub.f32 0.0, %v2969_v24  ;;  %v542_v41 = vsub.f32 0.0, %v2972_v1 }
  0xd3   :  { %2375 = vpow2.f32 %v671_v32  ;;  %v2202_v42 = vpack.c.bf16 %v1756_v36, %v1755_v17  ;;  %v1501_v45 = vmul.f32 %v2368_v23, %v1500_v43  ;;  %v2987_v46 = vadd.f32 %v2736_v40, %v474_v33 }
  0xd4   :  { %2377 = vrcp.f32 %v2981_v37  ;;  %v2989_v47 = vpop.eup %2371  ;;  %v609_v6 = vmul.f32 1.442695, %v526_v11  ;;  %v1771_v44 = vmul.f32 %v1496_v15, %v2750_v52  ;;  %vm1503_vm13 = vweird.f32 %v2910_v39  ;;  %v477_v11 = vpop.f32.mrf.mxu3 }
  0xd5   :  { %2379 = vpow2.f32 %v577_v38  ;;  %2294 = vst [vmem:[%s4535_s3 + $0x80] sm:$0xff] %v2202_v42   ;;  %v1502_v49 = vadd.f32 %v2368_v23, %v1501_v45  ;;  %v794_v54 = vmul.f32 %v2989_v47, %v2955_v19  ;;  %vm1505_vm14 = vmor %vm1503_vm13, %vm1504_vm12  ;;  %v1510_v58 = vor.u32 1.1754944e-38, %v1509_v29 }
  0xd6   :  { %v2374_v48 = vpop.eup %2373  ;;  %2381 = vpow2.f32 %v609_v6  ;;  %v641_v60 = vmul.f32 1.442695, %v542_v41  ;;  %vm1508_vm15 = vcmp.eq.f32.partialorder %v1507_v28, 8.507059e+37  ;;  %v558_v62 = vsub.f32 0.0, %v2987_v46 }
  0xd7   :  { %v2999_v59 = vadd.f32 1.0, %v2374_v48  ;;  %v1506_v61 = vsel %vm1505_vm14, %v2368_v23, %v1502_v49  ;;  %v795_v52 = vsub.f32 1.0, %v794_v54  ;;  %vm798_vm0 = vweird.f32 %v2955_v19 }
  0xd8   :  { %v1511_v34 = vsel %vm1508_vm15, %v1510_v58, %v1506_v61  ;;  %v802_v39 = vand.u32 2147483647, %v2955_v19  ;;  %v804_v35 = vand.u32 2147483648, %v2955_v19  ;;  %v1042_v14 = vand.u32 2147483647, %v2981_v37 }
  0xd9   :  { %v2376_v63 = vpop.eup %2375  ;;  %2383 = vrcp.f32 %v2999_v59  ;;  %v1772_v2 = vmul.f32 %v1511_v34, %v2786_v18  ;;  %v796_v4 = vmul.f32 %v2989_v47, %v795_v52  ;;  %v673_v3 = vmul.f32 1.442695, %v558_v62 }
  0xda   :  { %v3005_v0 = vpop.eup %2377  ;;  %v3010_v7 = vadd.f32 1.0, %v2376_v63  ;;  %2385 = vpow2.f32 %v641_v60  ;;  %vm799_vm1 = vweird.f32 %v2989_v47  ;;  %vm3018_vm2 = vcmp.eq.f32.partialorder %v802_v39, 8.507059e+37 }
  0xdb   :  { %v2380_v8 = vpop.eup %2379  ;;  %v1034_v9 = vmul.f32 %v3005_v0, %v2981_v37  ;;  %v2242_v10 = vpack.c.bf16 %v1772_v2, %v1771_v44  ;;  %v797_v55 = vadd.f32 %v2989_v47, %v796_v4  ;;  %v1044_v17 = vand.u32 2147483648, %v2981_v37  ;;  %vm3034_vm3 = vmor %vm798_vm0, %vm799_vm1  ;;  %v397_v2 = vpop.f32.mrf.mxu1 }
  0xdc   :  { %2387 = vrcp.f32 %v3010_v7  ;;  %v2382_v18 = vpop.eup %2381  ;;  %v1282_v20 = vand.u32 2147483647, %v2999_v59  ;;  %v1284_v53 = vand.u32 2147483648, %v2999_v59  ;;  %v3028_v15 = vadd.f32 1.0, %v2380_v8 }
  0xdd   :  { %v1035_v16 = vsub.f32 1.0, %v1034_v9  ;;  %2302 = vst [vmem:[%s4535_s3 + $0xc0] sm:$0xff] %v2242_v10   ;;  %v3030_v56 = vadd.f32 1.0, %v2382_v18  ;;  %2389 = vpow2.f32 %v673_v3  ;;  %v805_v23 = vor.u32 1.1754944e-38, %v804_v35  ;;  %v437_v9 = vpop.f32.mrf.mxu2 }
  0xde   :  { %vm1038_vm4 = vweird.f32 %v2981_v37  ;;  %vm3040_vm5 = vcmp.eq.f32.partialorder %v1042_v14, 8.507059e+37  ;;  %v801_v26 = vsel %vm3034_vm3, %v2989_v47, %v797_v55  ;;  %vm1039_vm6 = vweird.f32 %v3005_v0 }
  0xdf   :  { %v2384_v21 = vpop.eup %2383  ;;  %v1036_v51 = vmul.f32 %v3005_v0, %v1035_v16  ;;  %2391 = vrcp.f32 %v3028_v15  ;;  %v1045_v28 = vor.u32 1.1754944e-38, %v1044_v17  ;;  %vm1278_vm7 = vweird.f32 %v2999_v59  ;;  %vm3064_vm9 = vmor %vm1038_vm4, %vm1039_vm6 }
  0xe0   :  { %v1274_v19 = vmul.f32 %v2384_v21, %v2999_v59  ;;  %v2386_v12 = vpop.eup %2385  ;;  %v1524_v29 = vand.u32 2147483648, %v3010_v7  ;;  %vm3055_vm8 = vcmp.eq.f32.partialorder %v1282_v20, 8.507059e+37  ;;  %v1285_v43 = vor.u32 1.1754944e-38, %v1284_v53 }
  0xe1   :  { %v1037_v27 = vadd.f32 %v3005_v0, %v1036_v51  ;;  %2393 = vrcp.f32 %v3030_v56  ;;  %v806_v38 = vsel %vm3018_vm2, %v805_v23, %v801_v26  ;;  %vm1518_vm10 = vweird.f32 %v3010_v7 }
  0xe2   :  { %v3053_v32 = vpop.eup %2387  ;;  %v1275_v33 = vsub.f32 1.0, %v1274_v19  ;;  %v1522_v42 = vand.u32 2147483647, %v3010_v7  ;;  %v817_v45 = vand.u32 2147483647, %v3028_v15  ;;  %vm1279_vm11 = vweird.f32 %v2384_v21 }
  0xe3   :  { %v1514_v41 = vmul.f32 %v3053_v32, %v3010_v7  ;;  %v2390_v47 = vpop.eup %2389  ;;  %v1041_v6 = vsel %vm3064_vm9, %v3005_v0, %v1037_v27  ;;  %v819_v37 = vand.u32 2147483648, %v3028_v15  ;;  %v3077_v49 = vor.u32 1.1754944e-38, %v1524_v29  ;;  %vm1280_vm14 = vmor %vm1278_vm7, %vm1279_vm11  ;;  %v357_v0 = vpop.f32.mrf.mxu0 }
  0xe4   :  { %v1276_v48 = vmul.f32 %v2384_v21, %v1275_v33  ;;  %v1057_v54 = vand.u32 2147483647, %v3030_v56  ;;  %v3080_v58 = vadd.f32 1.0, %v2386_v12  ;;  %v3083_v61 = vmul.f32 %v806_v38, %v2796_v30 }
  0xe5   :  { %v1515_v44 = vsub.f32 1.0, %v1514_v41  ;;  %v2392_v60 = vpop.eup %2391  ;;  %vm1519_vm12 = vweird.f32 %v3053_v32  ;;  %vm813_vm13 = vweird.f32 %v3028_v15  ;;  %v1046_v62 = vsel %vm3040_vm5, %v1045_v28, %v1041_v6 }
  0xe6   :  { %v1277_v52 = vadd.f32 %v2384_v21, %v1276_v48  ;;  %v809_v34 = vmul.f32 %v2392_v60, %v3028_v15  ;;  %vm3093_vm15 = vcmp.eq.f32.partialorder %v817_v45, 8.507059e+37  ;;  %vm1053_vm0 = vweird.f32 %v3030_v56  ;;  %vm3129_vm3 = vmor %vm1518_vm10, %vm1519_vm12 }
  0xe7   :  { %v1516_v63 = vmul.f32 %v3053_v32, %v1515_v44  ;;  %v3098_v30 = vadd.f32 1.0, %v2390_v47  ;;  %v2394_v4 = vpop.eup %2393  ;;  %v820_v8 = vor.u32 1.1754944e-38, %v819_v37  ;;  %v1059_v59 = vand.u32 2147483648, %v3030_v56 }
  0xe8   :  { %v1281_v35 = vsel %vm1280_vm14, %v2384_v21, %v1277_v52  ;;  %2395 = vrcp.f32 %v3080_v58  ;;  %v810_v10 = vsub.f32 1.0, %v809_v34  ;;  %v1049_v55 = vmul.f32 %v2394_v4, %v3030_v56  ;;  %v399_v56 = vpop.f32.mrf.mxu1 }
  0xe9   :  { %v1286_v14 = vsel %vm3055_vm8, %v1285_v43, %v1281_v35  ;;  %v3105_v3 = vadd.f32 %v3053_v32, %v1516_v63  ;;  %vm3108_vm1 = vcmp.eq.f32.partialorder %v1057_v54, 8.507059e+37  ;;  %vm814_vm2 = vweird.f32 %v2392_v60 }
  0xea   :  { %v1299_v13 = vand.u32 2147483648, %v3080_v58  ;;  %v3114_v16 = vadd.f32 %v2736_v40, %v357_v0  ;;  %v3117_v17 = vadd.f32 %v2736_v40, %v397_v2  ;;  %v811_v20 = vmul.f32 %v2392_v60, %v810_v10  ;;  %vm815_vm7 = vmor %vm813_vm13, %vm814_vm2 }
  0xeb   :  { %v1050_v53 = vsub.f32 1.0, %v1049_v55  ;;  %v1297_v21 = vand.u32 2147483647, %v3080_v58  ;;  %2397 = vrcp.f32 %v3098_v30  ;;  %v1741_v22 = vmul.f32 %v1046_v62, %v2799_v31  ;;  %v359_v54 = vpop.f32.mrf.mxu0  ;;  %v439_v62 = vpop.f32.mrf.mxu2 }
  0xec   :  { %v3123_v23 = vmul.f32 %v1286_v14, %v2921_v57  ;;  %vm1054_vm4 = vweird.f32 %v2394_v4  ;;  %v1060_v25 = vor.u32 1.1754944e-38, %v1059_v59  ;;  %v1521_v26 = vsel %vm3129_vm3, %v3053_v32, %v3105_v3 }
  0xed   :  { %v812_v19 = vadd.f32 %v2392_v60, %v811_v20  ;;  %v1051_v31 = vmul.f32 %v2394_v4, %v1050_v53  ;;  %vm1293_vm5 = vweird.f32 %v3080_v58  ;;  %v1300_v57 = vor.u32 1.1754944e-38, %v1299_v13  ;;  %vm1055_vm9 = vmor %vm1053_vm0, %vm1054_vm4 }
  0xee   :  { %v2396_v12 = vpop.eup %2395  ;;  %vm3138_vm6 = vcmp.eq.f32.partialorder %v1522_v42, 8.507059e+37  ;;  %v1537_v7 = vand.u32 2147483647, %v3098_v30  ;;  %v511_v28 = vsub.f32 0.0, %v3114_v16  ;;  %v527_v29 = vsub.f32 0.0, %v3117_v17 }
  0xef   :  { %v3149_v32 = vadd.f32 %v2736_v40, %v437_v9  ;;  %v816_v33 = vsel %vm815_vm7, %v2392_v60, %v812_v19  ;;  %v1052_v36 = vadd.f32 %v2394_v4, %v1051_v31  ;;  %v1289_v43 = vmul.f32 %v2396_v12, %v3080_v58 }
  0xf0   :  { %vm3152_vm8 = vcmp.eq.f32.partialorder %v1297_v21, 8.507059e+37  ;;  %v1539_v15 = vand.u32 2147483648, %v3098_v30  ;;  %v821_v41 = vsel %vm3093_vm15, %v820_v8, %v816_v33  ;;  %vm1294_vm10 = vweird.f32 %v2396_v12 }
  0xf1   :  { %v579_v42 = vmul.f32 1.442695, %v511_v28  ;;  %v611_v45 = vmul.f32 1.442695, %v527_v29  ;;  %v2398_v47 = vpop.eup %2397  ;;  %v1726_v6 = vmul.f32 %v821_v41, %v2945_v5  ;;  %v1056_v48 = vsel %vm1055_vm9, %v2394_v4, %v1052_v36  ;;  %vm1295_vm12 = vmor %vm1293_vm5, %vm1294_vm10 }
  0xf2   :  { %v1290_v37 = vsub.f32 1.0, %v1289_v43  ;;  %v543_v44 = vsub.f32 0.0, %v3149_v32  ;;  %v1061_v60 = vsel %vm3108_vm1, %v1060_v25, %v1056_v48  ;;  %v1529_v52 = vmul.f32 %v2398_v47, %v3098_v30  ;;  %v479_v25 = vpop.f32.mrf.mxu3 }
  0xf3   :  { %vm1534_vm11 = vweird.f32 %v2398_v47  ;;  %2399 = vpow2.f32 %v579_v42  ;;  %v2127_v63 = vpack.c.bf16 %v1726_v6, %v3083_v61  ;;  %v1742_v34 = vmul.f32 %v1061_v60, %v2969_v24 }
  0xf4   :  { %v1291_v39 = vmul.f32 %v2396_v12, %v1290_v37  ;;  %2401 = vpow2.f32 %v611_v45  ;;  %v1530_v5 = vsub.f32 1.0, %v1529_v52  ;;  %v643_v0 = vmul.f32 1.442695, %v543_v44  ;;  %v402_v44 = vpop.f32.mrf.mxu1 }
  0xf5   :  { %v3170_v2 = vadd.f32 %v2736_v40, %v477_v11  ;;  %v3173_v4 = vadd.f32 %v2736_v40, %v359_v54  ;;  %2279 = vst [vmem:[%s4535_s3 + $0x8] sm:$0xff] %v2127_v63   ;;  %v2167_v35 = vpack.c.bf16 %v1742_v34, %v1741_v22  ;;  %v3179_v61 = vadd.f32 %v2736_v40, %v399_v56 }
  0xf6   :  { %v1292_v8 = vadd.f32 %v2396_v12, %v1291_v39  ;;  %v3182_v24 = vadd.f32 %v2736_v40, %v439_v62  ;;  %v1531_v59 = vmul.f32 %v2398_v47, %v1530_v5  ;;  %2403 = vpow2.f32 %v643_v0 }
  0xf7   :  { %v559_v9 = vsub.f32 0.0, %v3170_v2  ;;  %v512_v14 = vsub.f32 0.0, %v3173_v4  ;;  %v1526_v3 = vsel %vm3138_vm6, %v3077_v49, %v1521_v26  ;;  %2287 = vst [vmem:[%s4535_s3 + $0x48] sm:$0xff] %v2167_v35   ;;  %vm1533_vm13 = vweird.f32 %v3098_v30 }
  0xf8   :  { %v1296_v10 = vsel %vm1295_vm12, %v2396_v12, %v1292_v8  ;;  %vm3196_vm14 = vcmp.eq.f32.partialorder %v1537_v7, 8.507059e+37  ;;  %v1532_v13 = vadd.f32 %v2398_v47, %v1531_v59  ;;  %v528_v53 = vsub.f32 0.0, %v3179_v61  ;;  %vm1535_vm15 = vmor %vm1533_vm13, %vm1534_vm11 }
  0xf9   :  { %v2400_v55 = vpop.eup %2399  ;;  %v1301_v18 = vsel %vm3152_vm8, %v1300_v57, %v1296_v10  ;;  %v675_v20 = vmul.f32 1.442695, %v559_v9  ;;  %v1540_v22 = vor.u32 1.1754944e-38, %v1539_v15  ;;  %v544_v30 = vsub.f32 0.0, %v3182_v24 }
  0xfa   :  { %v2402_v49 = vpop.eup %2401  ;;  %v1758_v21 = vmul.f32 %v1301_v18, %v2972_v1  ;;  %v3205_v51 = vadd.f32 1.0, %v2400_v55  ;;  %v1536_v26 = vsel %vm1535_vm15, %v2398_v47, %v1532_v13  ;;  %v581_v31 = vmul.f32 1.442695, %v512_v14  ;;  %v362_v47 = vpop.f32.mrf.mxu0 }
  0xfb   :  { %v3208_v19 = vadd.f32 1.0, %v2402_v49  ;;  %2405 = vpow2.f32 %v675_v20  ;;  %v1773_v57 = vmul.f32 %v1526_v3, %v2933_v50  ;;  %v1541_v1 = vsel %vm3196_vm14, %v1540_v22, %v1536_v26 }
  0xfc   :  { %v2207_v12 = vpack.c.bf16 %v1758_v21, %v3123_v23  ;;  %2407 = vrcp.f32 %v3205_v51  ;;  %v2404_v27 = vpop.eup %2403  ;;  %v1774_v7 = vmul.f32 %v1541_v1, %v2987_v46  ;;  %v613_v28 = vmul.f32 1.442695, %v528_v53 }
  0xfd   :  { %2409 = vrcp.f32 %v3208_v19  ;;  %v3218_v29 = vadd.f32 %v2736_v40, %v479_v25  ;;  %v3223_v50 = vadd.f32 1.0, %v2404_v27  ;;  %v645_v33 = vmul.f32 1.442695, %v544_v30 }
  0xfe   :  { %2295 = vst [vmem:[%s4535_s3 + $0x88] sm:$0xff] %v2207_v12   ;;  %v2247_v23 = vpack.c.bf16 %v1774_v7, %v1773_v57  ;;  %2411 = vpow2.f32 %v581_v31  ;;  %v834_v46 = vand.u32 2147483648, %v3205_v51  ;;  %v832_v15 = vand.u32 2147483647, %v3205_v51 }
  0xff   :  { %2413 = vrcp.f32 %v3223_v50  ;;  %v560_v43 = vsub.f32 0.0, %v3218_v29  ;;  %v1074_v11 = vand.u32 2147483648, %v3208_v19  ;;  %vm828_vm0 = vweird.f32 %v3205_v51 }
 0x100   :  { %2303 = vst [vmem:[%s4535_s3 + $0xc8] sm:$0xff] %v2247_v23   ;;  %2415 = vpow2.f32 %v613_v28  ;;  %vm1068_vm1 = vweird.f32 %v3208_v19  ;;  %v1072_v48 = vand.u32 2147483647, %v3208_v19  ;;  %v1314_v37 = vand.u32 2147483648, %v3223_v50 }
 0x101   :  { %v2406_v36 = vpop.eup %2405  ;;  %2417 = vpow2.f32 %v645_v33  ;;  %v835_v52 = vor.u32 1.1754944e-38, %v834_v46  ;;  %v1312_v56 = vand.u32 2147483647, %v3223_v50  ;;  %v677_v62 = vmul.f32 1.442695, %v560_v43 }
 0x102   :  { %v3231_v38 = vpop.eup %2407  ;;  %v3235_v41 = vadd.f32 1.0, %v2406_v36  ;;  %vm3251_vm2 = vcmp.eq.f32.partialorder %v832_v15, 8.507059e+37  ;;  %v1075_v5 = vor.u32 1.1754944e-38, %v1074_v11  ;;  %v3258_v35 = vadd.f32 %v2736_v40, %v362_v47 }
 0x103   :  { %v3237_v42 = vpop.eup %2409  ;;  %v824_v45 = vmul.f32 %v3231_v38, %v3205_v51  ;;  %vm1308_vm3 = vweird.f32 %v3223_v50  ;;  %v3265_v14 = vadd.f32 %v2736_v40, %v402_v44  ;;  %vm829_vm4 = vweird.f32 %v3231_v38 }
 0x104   :  { %v1064_v6 = vmul.f32 %v3237_v42, %v3208_v19  ;;  %2419 = vrcp.f32 %v3235_v41  ;;  %v2412_v54 = vpop.eup %2411  ;;  %vm3269_vm5 = vcmp.eq.f32.partialorder %v1072_v48, 8.507059e+37  ;;  %v1315_v58 = vor.u32 1.1754944e-38, %v1314_v37  ;;  %vm3291_vm8 = vmor %vm828_vm0, %vm829_vm4 }
 0x105   :  { %v825_v60 = vsub.f32 1.0, %v824_v45  ;;  %v3249_v63 = vpop.eup %2413  ;;  %v3255_v0 = vadd.f32 1.0, %v2412_v54  ;;  %vm3275_vm6 = vcmp.eq.f32.partialorder %v1312_v56, 8.507059e+37  ;;  %v1554_v40 = vand.u32 2147483648, %v3235_v41 }
 0x106   :  { %v1065_v39 = vsub.f32 1.0, %v1064_v6  ;;  %v2416_v8 = vpop.eup %2415  ;;  %v1304_v9 = vmul.f32 %v3249_v63, %v3223_v50  ;;  %vm1069_vm7 = vweird.f32 %v3237_v42  ;;  %v513_v22 = vsub.f32 0.0, %v3258_v35  ;;  %v404_v50 = vpop.f32.mrf.mxu1 }
 0x107   :  { %v826_v59 = vmul.f32 %v3231_v38, %v825_v60  ;;  %2421 = vrcp.f32 %v3255_v0  ;;  %v2418_v55 = vpop.eup %2417  ;;  %v3284_v21 = vadd.f32 1.0, %v2416_v8  ;;  %vm1309_vm9 = vweird.f32 %v3249_v63  ;;  %vm3310_vm11 = vmor %vm1068_vm1, %vm1069_vm7 }
 0x108   :  { %v1066_v3 = vmul.f32 %v3237_v42, %v1065_v39  ;;  %v1305_v13 = vsub.f32 1.0, %v1304_v9  ;;  %2423 = vpow2.f32 %v677_v62  ;;  %vm1548_vm10 = vweird.f32 %v3235_v41  ;;  %vm3323_vm12 = vmor %vm1308_vm3, %vm1309_vm9 }
 0x109   :  { %v827_v18 = vadd.f32 %v3231_v38, %v826_v59  ;;  %v1552_v31 = vand.u32 2147483647, %v3235_v41  ;;  %v847_v51 = vand.u32 2147483647, %v3255_v0  ;;  %v849_v12 = vand.u32 2147483648, %v3255_v0 }
 0x10a   :  { %v3280_v53 = vpop.eup %2419  ;;  %v1067_v49 = vadd.f32 %v3237_v42, %v1066_v3  ;;  %v1306_v25 = vmul.f32 %v3249_v63, %v1305_v13  ;;  %v3306_v1 = vadd.f32 1.0, %v2418_v55  ;;  %v1555_v23 = vor.u32 1.1754944e-38, %v1554_v40 }
 0x10b   :  { %v1544_v26 = vmul.f32 %v3280_v53, %v3235_v41  ;;  %v831_v57 = vsel %vm3291_vm8, %v3231_v38, %v827_v18  ;;  %v529_v33 = vsub.f32 0.0, %v3265_v14  ;;  %vm843_vm13 = vweird.f32 %v3255_v0  ;;  %v442_v41 = vpop.f32.mrf.mxu2 }
 0x10c   :  { %v1307_v7 = vadd.f32 %v3249_v63, %v1306_v25  ;;  %v1071_v46 = vsel %vm3310_vm11, %v3237_v42, %v1067_v49  ;;  %2425 = vrcp.f32 %v3284_v21  ;;  %v583_v43 = vmul.f32 1.442695, %v513_v22 }
 0x10d   :  { %v1545_v28 = vsub.f32 1.0, %v1544_v26  ;;  %v2422_v36 = vpop.eup %2421  ;;  %v836_v15 = vsel %vm3251_vm2, %v835_v52, %v831_v57  ;;  %vm3335_vm14 = vcmp.eq.f32.partialorder %v1552_v31, 8.507059e+37  ;;  %vm1549_vm15 = vweird.f32 %v3280_v53  ;;  %v482_v57 = vpop.f32.mrf.mxu3 }
 0x10e   :  { %v2424_v38 = vpop.eup %2423  ;;  %v1311_v11 = vsel %vm3323_vm12, %v3249_v63, %v1307_v7  ;;  %v839_v45 = vmul.f32 %v2422_v36, %v3255_v0  ;;  %vm3341_vm0 = vcmp.eq.f32.partialorder %v847_v51, 8.507059e+37  ;;  %v850_v6 = vor.u32 1.1754944e-38, %v849_v12  ;;  %vm3363_vm2 = vmor %vm1548_vm10, %vm1549_vm15  ;;  %v3398_v0 = vld [vmem:[%s4533_s2] ss:$0 sm:$0xff] }
 0x10f   :  { %v1546_v42 = vmul.f32 %v3280_v53, %v1545_v28  ;;  %2427 = vrcp.f32 %v3306_v1  ;;  %v1076_v48 = vsel %vm3269_vm5, %v1075_v5, %v1071_v46  ;;  %v1087_v54 = vand.u32 2147483647, %v3284_v21  ;;  %v364_v28 = vpop.f32.mrf.mxu0 }
 0x110   :  { %v840_v44 = vsub.f32 1.0, %v839_v45  ;;  %v1727_v60 = vmul.f32 %v836_v15, %v3114_v16  ;;  %v1316_v52 = vsel %vm3275_vm6, %v1315_v58, %v1311_v11  ;;  %vm844_vm1 = vweird.f32 %v2422_v36 }
 0x111   :  { %v1547_v37 = vadd.f32 %v3280_v53, %v1546_v42  ;;  %v3353_v56 = vadd.f32 1.0, %v2424_v38  ;;  %v1089_v63 = vand.u32 2147483648, %v3284_v21  ;;  %2429 = vpow2.f32 %v583_v43  ;;  %vm845_vm5 = vmor %vm843_vm13, %vm844_vm1 }
 0x112   :  { %v841_v62 = vmul.f32 %v2422_v36, %v840_v44  ;;  %v615_v34 = vmul.f32 1.442695, %v529_v33  ;;  %v2426_v39 = vpop.eup %2425  ;;  %v3357_v5 = vmul.f32 %v1076_v48, %v3117_v17  ;;  %vm1083_vm3 = vweird.f32 %v3284_v21 }
 0x113   :  { %v1327_v8 = vand.u32 2147483647, %v3306_v1  ;;  %2431 = vrcp.f32 %v3353_v56  ;;  %v1551_v59 = vsel %vm3363_vm2, %v3280_v53, %v1547_v37  ;;  %v1079_v9 = vmul.f32 %v2426_v39, %v3284_v21  ;;  %v444_v16 = vpop.f32.mrf.mxu2 }
 0x114   :  { %v842_v17 = vadd.f32 %v2422_v36, %v841_v62  ;;  %vm3374_vm4 = vcmp.eq.f32.partialorder %v1087_v54, 8.507059e+37  ;;  %v3379_v58 = vmul.f32 %v1316_v52, %v3149_v32  ;;  %vm1323_vm6 = vweird.f32 %v3306_v1 }
 0x115   :  { %v2428_v10 = vpop.eup %2427  ;;  %v1329_v55 = vand.u32 2147483648, %v3306_v1  ;;  %2433 = vpow2.f32 %v615_v34  ;;  %v1080_v13 = vsub.f32 1.0, %v1079_v9  ;;  %v1090_v20 = vor.u32 1.1754944e-38, %v1089_v63 }
 0x116   :  { %v846_v18 = vsel %vm845_vm5, %v2422_v36, %v842_v17  ;;  %v1319_v40 = vmul.f32 %v2428_v10, %v3306_v1  ;;  %v1556_v53 = vsel %vm3335_vm14, %v1555_v23, %v1551_v59  ;;  %vm3391_vm7 = vcmp.eq.f32.partialorder %v1327_v8, 8.507059e+37  ;;  %v484_v59 = vpop.f32.mrf.mxu3 }
 0x117   :  { %v851_v32 = vsel %vm3341_vm0, %v850_v6, %v846_v18  ;;  %v3401_v22 = vadd.f32 %v3398_v0, %v442_v41  ;;  %v2430_v30 = vpop.eup %2429  ;;  %v1081_v26 = vmul.f32 %v2426_v39, %v1080_v13  ;;  %vm1084_vm8 = vweird.f32 %v2426_v39 }
 0x118   :  { %v1728_v25 = vmul.f32 %v851_v32, %v3173_v4  ;;  %v1320_v31 = vsub.f32 1.0, %v1319_v40  ;;  %vm1324_vm9 = vweird.f32 %v2428_v10  ;;  %v1330_v12 = vor.u32 1.1754944e-38, %v1329_v55  ;;  %vm1085_vm10 = vmor %vm1083_vm3, %vm1084_vm8 }
 0x119   :  { %v2432_v51 = vpop.eup %2431  ;;  %v3404_v27 = vadd.f32 1.0, %v2430_v30  ;;  %v545_v7 = vsub.f32 0.0, %v3401_v22  ;;  %v1082_v33 = vadd.f32 %v2426_v39, %v1081_v26  ;;  %v3409_v4 = vmul.f32 %v1556_v53, %v3170_v2  ;;  %vm1325_vm11 = vmor %vm1323_vm6, %vm1324_vm9 }
 0x11a   :  { %v2132_v23 = vpack.c.bf16 %v1728_v25, %v1727_v60  ;;  %v1321_v36 = vmul.f32 %v2428_v10, %v1320_v31  ;;  %v1559_v46 = vmul.f32 %v2432_v51, %v3353_v56  ;;  %v1567_v43 = vand.u32 2147483647, %v3353_v56  ;;  %v407_v25 = vpop.f32.mrf.mxu1 }
 0x11b   :  { %v2434_v19 = vpop.eup %2433  ;;  %v1569_v38 = vand.u32 2147483648, %v3353_v56  ;;  %2435 = vrcp.f32 %v3404_v27  ;;  %v1086_v15 = vsel %vm1085_vm10, %v2426_v39, %v1082_v33  ;;  %v3421_v2 = vadd.f32 %v3398_v0, %v482_v57 }
 0x11c   :  { %2280 = vst [vmem:[%s4535_s3 + $0x10] sm:$0xff] %v2132_v23   ;;  %v1322_v11 = vadd.f32 %v2428_v10, %v1321_v36  ;;  %v1560_v42 = vsub.f32 1.0, %v1559_v46  ;;  %v1091_v21 = vsel %vm3374_vm4, %v1090_v20, %v1086_v15  ;;  %v3428_v45 = vadd.f32 1.0, %v2434_v19 }
 0x11d   :  { %v647_v47 = vmul.f32 1.442695, %v545_v7  ;;  %v3431_v6 = vadd.f32 %v3398_v0, %v364_v28  ;;  %v1744_v48 = vmul.f32 %v1091_v21, %v3179_v61  ;;  %vm1564_vm12 = vweird.f32 %v2432_v51 }
 0x11e   :  { %v1326_v37 = vsel %vm1325_vm11, %v2428_v10, %v1322_v11  ;;  %v1561_v44 = vmul.f32 %v2432_v51, %v1560_v42  ;;  %vm1563_vm13 = vweird.f32 %v3353_v56  ;;  %vm3437_vm14 = vcmp.eq.f32.partialorder %v1567_v43, 8.507059e+37  ;;  %v367_v10 = vpop.f32.mrf.mxu0 }
 0x11f   :  { %v1331_v54 = vsel %vm3391_vm7, %v1330_v12, %v1326_v37  ;;  %2437 = vrcp.f32 %v3428_v45  ;;  %v2172_v1 = vpack.c.bf16 %v1744_v48, %v3357_v5  ;;  %v3445_v61 = vadd.f32 %v3398_v0, %v404_v50  ;;  %vm1565_vm15 = vmor %vm1563_vm13, %vm1564_vm12 }
 0x120   :  { %v1760_v52 = vmul.f32 %v1331_v54, %v3182_v24  ;;  %v1562_v62 = vadd.f32 %v2432_v51, %v1561_v44  ;;  %v1570_v34 = vor.u32 1.1754944e-38, %v1569_v38  ;;  %2439 = vpow2.f32 %v647_v47 }
 0x121   :  { %v3447_v63 = vpop.eup %2435  ;;  %v561_v56 = vsub.f32 0.0, %v3421_v2  ;;  %v514_v39 = vsub.f32 0.0, %v3431_v6  ;;  %2288 = vst [vmem:[%s4535_s3 + $0x50] sm:$0xff] %v2172_v1   ;;  %vm858_vm0 = vweird.f32 %v3404_v27  ;;  %v862_v9 = vand.u32 2147483647, %v3404_v27 }
 0x122   :  { %v2212_v24 = vpack.c.bf16 %v1760_v52, %v3379_v58  ;;  %v1566_v5 = vsel %vm1565_vm15, %v2432_v51, %v1562_v62  ;;  %v854_v8 = vmul.f32 %v3447_v63, %v3404_v27  ;;  %v530_v18 = vsub.f32 0.0, %v3445_v61 }
 0x123   :  { %v1571_v17 = vsel %vm3437_vm14, %v1570_v34, %v1566_v5  ;;  %v679_v3 = vmul.f32 1.442695, %v561_v56  ;;  %v585_v41 = vmul.f32 1.442695, %v514_v39  ;;  %v3467_v13 = vadd.f32 %v3398_v0, %v444_v16 }
 0x124   :  { %2296 = vst [vmem:[%s4535_s3 + $0x90] sm:$0xff] %v2212_v24   ;;  %v1776_v58 = vmul.f32 %v1571_v17, %v3218_v29  ;;  %v855_v55 = vsub.f32 1.0, %v854_v8  ;;  %v864_v40 = vand.u32 2147483648, %v3404_v27  ;;  %vm1098_vm1 = vweird.f32 %v3428_v45 }
 0x125   :  { %v2438_v20 = vpop.eup %2437  ;;  %2441 = vpow2.f32 %v679_v3  ;;  %v3472_v53 = vadd.f32 %v3398_v0, %v484_v59  ;;  %v3478_v30 = vadd.f32 %v3398_v0, %v367_v10  ;;  %v617_v31 = vmul.f32 1.442695, %v530_v18 }
 0x126   :  { %v2252_v32 = vpack.c.bf16 %v1776_v58, %v3409_v4  ;;  %v856_v49 = vmul.f32 %v3447_v63, %v855_v55  ;;  %v1094_v29 = vmul.f32 %v2438_v20, %v3428_v45  ;;  %v2440_v26 = vpop.eup %2439  ;;  %2443 = vpow2.f32 %v585_v41 }
 0x127   :  { %v546_v57 = vsub.f32 0.0, %v3467_v13  ;;  %v562_v51 = vsub.f32 0.0, %v3472_v53  ;;  %vm859_vm2 = vweird.f32 %v3447_v63  ;;  %v3487_v28 = vadd.f32 1.0, %v2440_v26 }
 0x128   :  { %2304 = vst [vmem:[%s4535_s3 + $0xd0] sm:$0xff] %v2252_v32   ;;  %v857_v12 = vadd.f32 %v3447_v63, %v856_v49  ;;  %v1095_v7 = vsub.f32 1.0, %v1094_v29  ;;  %2445 = vpow2.f32 %v617_v31  ;;  %v3490_v36 = vadd.f32 %v3398_v0, %v407_v25  ;;  %vm3496_vm4 = vmor %vm858_vm0, %vm859_vm2 }
 0x129   :  { %v649_v23 = vmul.f32 1.442695, %v546_v57  ;;  %v681_v33 = vmul.f32 1.442695, %v562_v51  ;;  %vm1099_vm3 = vweird.f32 %v2438_v20  ;;  %v1104_v19 = vand.u32 2147483648, %v3428_v45 }
 0x12a   :  { %v1096_v46 = vmul.f32 %v2438_v20, %v1095_v7  ;;  %2447 = vrcp.f32 %v3487_v28  ;;  %v1102_v38 = vand.u32 2147483647, %v3428_v45  ;;  %v515_v15 = vsub.f32 0.0, %v3478_v30  ;;  %vm1100_vm6 = vmor %vm1098_vm1, %vm1099_vm3 }
 0x12b   :  { %v2442_v4 = vpop.eup %2441  ;;  %2449 = vpow2.f32 %v649_v23  ;;  %v861_v11 = vsel %vm3496_vm4, %v3447_v63, %v857_v12  ;;  %vm863_vm5 = vcmp.eq.f32.partialorder %v862_v9, 8.507059e+37  ;;  %v865_v27 = vor.u32 1.1754944e-38, %v864_v40 }
 0x12c   :  { %v1097_v42 = vadd.f32 %v2438_v20, %v1096_v46  ;;  %v3505_v50 = vadd.f32 1.0, %v2442_v4  ;;  %2451 = vpow2.f32 %v681_v33  ;;  %v2444_v21 = vpop.eup %2443  ;;  %v531_v47 = vsub.f32 0.0, %v3490_v36 }
 0x12d   :  { %v1105_v37 = vor.u32 1.1754944e-38, %v1104_v19  ;;  %v1344_v44 = vand.u32 2147483648, %v3487_v28  ;;  %v866_v60 = vsel %vm863_vm5, %v865_v27, %v861_v11  ;;  %vm1103_vm7 = vcmp.eq.f32.partialorder %v1102_v38, 8.507059e+37 }
 0x12e   :  { %v1101_v48 = vsel %vm1100_vm6, %v2438_v20, %v1097_v42  ;;  %2453 = vrcp.f32 %v3505_v50  ;;  %v2446_v54 = vpop.eup %2445  ;;  %v3513_v1 = vadd.f32 1.0, %v2444_v21  ;;  %v587_v52 = vmul.f32 1.442695, %v515_v15 }
 0x12f   :  { %v1106_v63 = vsel %vm1103_vm7, %v1105_v37, %v1101_v48  ;;  %v1342_v45 = vand.u32 2147483647, %v3487_v28  ;;  %v3518_v34 = vadd.f32 1.0, %v2446_v54  ;;  %vm1338_vm8 = vweird.f32 %v3487_v28 }
 0x130   :  { %v3515_v62 = vpop.eup %2447  ;;  %2455 = vrcp.f32 %v3513_v1  ;;  %v619_v16 = vmul.f32 1.442695, %v531_v47  ;;  %v3525_v5 = vmul.f32 %v866_v60, %v3258_v35  ;;  %v1345_v8 = vor.u32 1.1754944e-38, %v1344_v44 }
 0x131   :  { %v2450_v56 = vpop.eup %2449  ;;  %v1334_v39 = vmul.f32 %v3515_v62, %v3487_v28  ;;  %v1584_v59 = vand.u32 2147483648, %v3505_v50  ;;  %2457 = vrcp.f32 %v3518_v34  ;;  %v3530_v17 = vmul.f32 %v1106_v63, %v3265_v14 }
 0x132   :  { %v2452_v24 = vpop.eup %2451  ;;  %v1582_v3 = vand.u32 2147483647, %v3505_v50  ;;  %2459 = vpow2.f32 %v587_v52  ;;  %vm3535_vm9 = vcmp.eq.f32.partialorder %v1342_v45, 8.507059e+37  ;;  %vm1578_vm10 = vweird.f32 %v3505_v50 }
 0x133   :  { %v1335_v9 = vsub.f32 1.0, %v1334_v39  ;;  %v877_v35 = vand.u32 2147483647, %v3513_v1  ;;  %v879_v58 = vand.u32 2147483648, %v3513_v1  ;;  %v3542_v55 = vadd.f32 1.0, %v2450_v56 }
 0x134   :  { %v3533_v41 = vpop.eup %2453  ;;  %v3544_v14 = vadd.f32 1.0, %v2452_v24  ;;  %vm1339_vm11 = vweird.f32 %v3515_v62  ;;  %2461 = vpow2.f32 %v619_v16  ;;  %v1585_v40 = vor.u32 1.1754944e-38, %v1584_v59  ;;  %v447_v16 = vpop.f32.mrf.mxu2 }
 0x135   :  { %v1336_v18 = vmul.f32 %v3515_v62, %v1335_v9  ;;  %v1574_v20 = vmul.f32 %v3533_v41, %v3505_v50  ;;  %v1117_v32 = vand.u32 2147483647, %v3518_v34  ;;  %v1119_v49 = vand.u32 2147483648, %v3518_v34  ;;  %vm3570_vm0 = vmor %vm1338_vm8, %vm1339_vm11 }
 0x136   :  { %2463 = vrcp.f32 %v3542_v55  ;;  %v2456_v29 = vpop.eup %2455  ;;  %vm873_vm12 = vweird.f32 %v3513_v1  ;;  %vm3556_vm13 = vcmp.eq.f32.partialorder %v1582_v3, 8.507059e+37  ;;  %vm3561_vm14 = vcmp.eq.f32.partialorder %v877_v35, 8.507059e+37  ;;  %v487_v3 = vpop.f32.mrf.mxu3 }
 0x137   :  { %v1337_v25 = vadd.f32 %v3515_v62, %v1336_v18  ;;  %v1575_v26 = vsub.f32 1.0, %v1574_v20  ;;  %2465 = vrcp.f32 %v3544_v14  ;;  %v2458_v31 = vpop.eup %2457  ;;  %v869_v51 = vmul.f32 %v2456_v29, %v3513_v1 }
 0x138   :  { %v880_v7 = vor.u32 1.1754944e-38, %v879_v58  ;;  %vm1113_vm15 = vweird.f32 %v3518_v34  ;;  %v2460_v23 = vpop.eup %2459  ;;  %vm1579_vm1 = vweird.f32 %v3533_v41  ;;  %v1109_v19 = vmul.f32 %v2458_v31, %v3518_v34  ;;  %v369_v34 = vpop.f32.mrf.mxu0 }
 0x139   :  { %v1576_v46 = vmul.f32 %v3533_v41, %v1575_v26  ;;  %v1357_v4 = vand.u32 2147483647, %v3542_v55  ;;  %v1341_v43 = vsel %vm3570_vm0, %v3515_v62, %v1337_v25  ;;  %v870_v38 = vsub.f32 1.0, %v869_v51  ;;  %vm3597_vm6 = vmor %vm1578_vm10, %vm1579_vm1 }
 0x13a   :  { %vm3581_vm2 = vcmp.eq.f32.partialorder %v1117_v32, 8.507059e+37  ;;  %v1120_v28 = vor.u32 1.1754944e-38, %v1119_v49  ;;  %v2462_v11 = vpop.eup %2461  ;;  %v1110_v21 = vsub.f32 1.0, %v1109_v19  ;;  %vm1353_vm3 = vweird.f32 %v3542_v55 }
 0x13b   :  { %v1577_v42 = vadd.f32 %v3533_v41, %v1576_v46  ;;  %v1359_v27 = vand.u32 2147483648, %v3542_v55  ;;  %v871_v48 = vmul.f32 %v2456_v29, %v870_v38  ;;  %vm874_vm4 = vweird.f32 %v2456_v29 }
 0x13c   :  { %v2464_v47 = vpop.eup %2463  ;;  %vm1593_vm5 = vweird.f32 %v3544_v14  ;;  %v3589_v37 = vadd.f32 1.0, %v2460_v23  ;;  %v1346_v54 = vsel %vm3535_vm9, %v1345_v8, %v1341_v43  ;;  %v1111_v52 = vmul.f32 %v2458_v31, %v1110_v21  ;;  %vm875_vm9 = vmor %vm873_vm12, %vm874_vm4  ;;  %v449_v38 = vpop.f32.mrf.mxu2 }
 0x13d   :  { %v2466_v44 = vpop.eup %2465  ;;  %vm1114_vm7 = vweird.f32 %v2458_v31  ;;  %v1349_v62 = vmul.f32 %v2464_v47, %v3542_v55  ;;  %vm3602_vm8 = vcmp.eq.f32.partialorder %v1357_v4, 8.507059e+37  ;;  %v1581_v45 = vsel %vm3597_vm6, %v3533_v41, %v1577_v42 }
 0x13e   :  { %v872_v56 = vadd.f32 %v2456_v29, %v871_v48  ;;  %v1589_v39 = vmul.f32 %v2466_v44, %v3544_v14  ;;  %v1597_v50 = vand.u32 2147483647, %v3544_v14  ;;  %v1112_v24 = vadd.f32 %v2458_v31, %v1111_v52  ;;  %vm1115_vm10 = vmor %vm1113_vm15, %vm1114_vm7  ;;  %v489_v21 = vpop.f32.mrf.mxu3 }
 0x13f   :  { %v1350_v8 = vsub.f32 1.0, %v1349_v62  ;;  %v1599_v59 = vand.u32 2147483648, %v3544_v14  ;;  %v3615_v9 = vadd.f32 1.0, %v2462_v11  ;;  %vm1354_vm11 = vweird.f32 %v2464_v47 }
 0x140   :  { %v876_v10 = vsel %vm875_vm9, %v2456_v29, %v872_v56  ;;  %v1590_v41 = vsub.f32 1.0, %v1589_v39  ;;  %2467 = vrcp.f32 %v3589_v37  ;;  %v1586_v1 = vsel %vm3556_vm13, %v1585_v40, %v1581_v45  ;;  %v409_v40 = vpop.f32.mrf.mxu1  ;;  %vm1355_vm13 = vmor %vm1353_vm3, %vm1354_vm11  ;;  %v372_v56 = vpop.f32.mrf.mxu0 }
 0x141   :  { %v881_v35 = vsel %vm3561_vm14, %v880_v7, %v876_v10  ;;  %v1116_v58 = vsel %vm1115_vm10, %v2458_v31, %v1112_v24  ;;  %v1351_v18 = vmul.f32 %v2464_v47, %v1350_v8  ;;  %vm1594_vm12 = vweird.f32 %v2466_v44 }
 0x142   :  { %v1730_v20 = vmul.f32 %v881_v35, %v3431_v6  ;;  %v1121_v32 = vsel %vm3581_vm2, %v1120_v28, %v1116_v58  ;;  %v1591_v49 = vmul.f32 %v2466_v44, %v1590_v41  ;;  %v1360_v26 = vor.u32 1.1754944e-38, %v1359_v27  ;;  %vm1595_vm15 = vmor %vm1593_vm5, %vm1594_vm12 }
 0x143   :  { %v1746_v29 = vmul.f32 %v1121_v32, %v3445_v61  ;;  %v1352_v25 = vadd.f32 %v2464_v47, %v1351_v18  ;;  %2469 = vrcp.f32 %v3615_v9  ;;  %v1761_v57 = vmul.f32 %v1346_v54, %v3401_v22 }
 0x144   :  { %v2137_v31 = vpack.c.bf16 %v1730_v20, %v3525_v5  ;;  %v1592_v6 = vadd.f32 %v2466_v44, %v1591_v49  ;;  %vm1598_vm14 = vcmp.eq.f32.partialorder %v1597_v50, 8.507059e+37  ;;  %v1777_v51 = vmul.f32 %v1586_v1, %v3421_v2 }
 0x145   :  { %v2177_v12 = vpack.c.bf16 %v1746_v29, %v3530_v17  ;;  %v1356_v61 = vsel %vm1355_vm13, %v2464_v47, %v1352_v25  ;;  %v1600_v7 = vor.u32 1.1754944e-38, %v1599_v59  ;;  %vm888_vm0 = vweird.f32 %v3589_v37 }
 0x146   :  { %v3640_v23 = vpop.eup %2467  ;;  %2281 = vst [vmem:[%s4535_s3 + $0x18] sm:$0xff] %v2137_v31   ;;  %v1361_v22 = vsel %vm3602_vm8, %v1360_v26, %v1356_v61  ;;  %v1596_v5 = vsel %vm1595_vm15, %v2466_v44, %v1592_v6  ;;  %v3649_v2 = vadd.f32 %v3398_v0, %v447_v16  ;;  %v3652_v17 = vadd.f32 %v3398_v0, %v487_v3 }
 0x147   :  { %2289 = vst [vmem:[%s4535_s3 + $0x58] sm:$0xff] %v2177_v12   ;;  %v1762_v55 = vmul.f32 %v1361_v22, %v3467_v13  ;;  %v1601_v14 = vsel %vm1598_vm14, %v1600_v7, %v1596_v5  ;;  %v884_v33 = vmul.f32 %v3640_v23, %v3589_v37  ;;  %v892_v46 = vand.u32 2147483647, %v3589_v37  ;;  %v492_v22 = vpop.f32.mrf.mxu3 }
 0x148   :  { %v1778_v19 = vmul.f32 %v1601_v14, %v3472_v53  ;;  %v894_v4 = vand.u32 2147483648, %v3589_v37  ;;  %vm1128_vm1 = vweird.f32 %v3615_v9  ;;  %v547_v43 = vsub.f32 0.0, %v3649_v2  ;;  %v412_v16 = vpop.f32.mrf.mxu1  ;;  %v452_v37 = vpop.f32.mrf.mxu2 }
 0x149   :  { %v3665_v15 = vpop.eup %2469  ;;  %v2217_v28 = vpack.c.bf16 %v1762_v55, %v1761_v57  ;;  %v885_v11 = vsub.f32 1.0, %v884_v33  ;;  %v563_v13 = vsub.f32 0.0, %v3652_v17  ;;  %v3669_v42 = vadd.f32 %v3398_v0, %v369_v34 }
 0x14a   :  { %v2257_v27 = vpack.c.bf16 %v1778_v19, %v1777_v51  ;;  %v1124_v53 = vmul.f32 %v3665_v15, %v3615_v9  ;;  %v1134_v47 = vand.u32 2147483648, %v3615_v9  ;;  %v651_v48 = vmul.f32 1.442695, %v547_v43 }
 0x14b   :  { %2297 = vst [vmem:[%s4535_s3 + $0x98] sm:$0xff] %v2217_v28   ;;  %v886_v44 = vmul.f32 %v3640_v23, %v885_v11  ;;  %v683_v54 = vmul.f32 1.442695, %v563_v13  ;;  %v516_v60 = vsub.f32 0.0, %v3669_v42  ;;  %v3680_v52 = vadd.f32 %v3398_v0, %v409_v40 }
 0x14c   :  { %2305 = vst [vmem:[%s4535_s3 + $0xd8] sm:$0xff] %v2257_v27   ;;  %v1125_v62 = vsub.f32 1.0, %v1124_v53  ;;  %2471 = vpow2.f32 %v651_v48  ;;  %v3686_v63 = vadd.f32 %v3398_v0, %v449_v38  ;;  %v3689_v45 = vadd.f32 %v3398_v0, %v489_v21 }
 0x14d   :  { %vm889_vm2 = vweird.f32 %v3640_v23  ;;  %2473 = vpow2.f32 %v683_v54  ;;  %v589_v39 = vmul.f32 1.442695, %v516_v60  ;;  %v532_v50 = vsub.f32 0.0, %v3680_v52 }
 0x14e   :  { %v887_v24 = vadd.f32 %v3640_v23, %v886_v44  ;;  %v1126_v8 = vmul.f32 %v3665_v15, %v1125_v62  ;;  %v548_v59 = vsub.f32 0.0, %v3686_v63  ;;  %v564_v3 = vsub.f32 0.0, %v3689_v45  ;;  %vm3709_vm4 = vmor %vm888_vm0, %vm889_vm2 }
 0x14f   :  { %vm1129_vm3 = vweird.f32 %v3665_v15  ;;  %2475 = vpow2.f32 %v589_v39  ;;  %v621_v10 = vmul.f32 1.442695, %v532_v50  ;;  %v3699_v41 = vadd.f32 %v3398_v0, %v372_v56 }
 0x150   :  { %v1127_v1 = vadd.f32 %v3665_v15, %v1126_v8  ;;  %v653_v35 = vmul.f32 1.442695, %v548_v59  ;;  %v685_v58 = vmul.f32 1.442695, %v564_v3  ;;  %v3703_v18 = vadd.f32 %v3398_v0, %v412_v16  ;;  %vm3719_vm5 = vmor %vm1128_vm1, %vm1129_vm3 }
 0x151   :  { %v1132_v32 = vand.u32 2147483647, %v3615_v9  ;;  %2477 = vpow2.f32 %v621_v10  ;;  %v891_v34 = vsel %vm3709_vm4, %v3640_v23, %v887_v24  ;;  %v895_v29 = vor.u32 1.1754944e-38, %v894_v4 }
 0x152   :  { %v2472_v49 = vpop.eup %2471  ;;  %2479 = vpow2.f32 %v653_v35  ;;  %v1131_v40 = vsel %vm3719_vm5, %v3665_v15, %v1127_v1  ;;  %v517_v31 = vsub.f32 0.0, %v3699_v41  ;;  %vm893_vm6 = vcmp.eq.f32.partialorder %v892_v46, 8.507059e+37 }
 0x153   :  { %v2474_v26 = vpop.eup %2473  ;;  %v3726_v57 = vadd.f32 1.0, %v2472_v49  ;;  %2481 = vpow2.f32 %v685_v58  ;;  %v1135_v6 = vor.u32 1.1754944e-38, %v1134_v47  ;;  %v533_v9 = vsub.f32 0.0, %v3703_v18 }
 0x154   :  { %v3729_v51 = vadd.f32 1.0, %v2474_v26  ;;  %v896_v61 = vsel %vm893_vm6, %v895_v29, %v891_v34  ;;  %vm1133_vm7 = vcmp.eq.f32.partialorder %v1132_v32, 8.507059e+37  ;;  %v3734_v7 = vadd.f32 %v3398_v0, %v452_v37 }
 0x155   :  { %v2476_v12 = vpop.eup %2475  ;;  %2483 = vrcp.f32 %v3726_v57  ;;  %v1136_v23 = vsel %vm1133_vm7, %v1135_v6, %v1131_v40  ;;  %v591_v14 = vmul.f32 1.442695, %v517_v31  ;;  %v3740_v46 = vmul.f32 %v896_v61, %v3478_v30 }
 0x156   :  { %2485 = vrcp.f32 %v3729_v51  ;;  %v3737_v55 = vadd.f32 1.0, %v2476_v12  ;;  %v623_v4 = vmul.f32 1.442695, %v533_v9  ;;  %v3745_v38 = vmul.f32 %v1136_v23, %v3490_v36 }
 0x157   :  { %v2478_v5 = vpop.eup %2477  ;;  %v549_v15 = vsub.f32 0.0, %v3734_v7  ;;  %v3750_v28 = vadd.f32 %v3398_v0, %v492_v22  ;;  %v1372_v11 = vand.u32 2147483647, %v3726_v57  ;;  %v1374_v13 = vand.u32 2147483648, %v3726_v57 }
 0x158   :  { %v2480_v33 = vpop.eup %2479  ;;  %v3742_v19 = vadd.f32 1.0, %v2478_v5  ;;  %2487 = vrcp.f32 %v3737_v55  ;;  %v1614_v30 = vand.u32 2147483648, %v3729_v51  ;;  %vm1368_vm8 = vweird.f32 %v3726_v57 }
 0x159   :  { %v2482_v43 = vpop.eup %2481  ;;  %v909_v36 = vand.u32 2147483648, %v3737_v55  ;;  %v3760_v27 = vadd.f32 1.0, %v2480_v33  ;;  %v1612_v44 = vand.u32 2147483647, %v3729_v51  ;;  %v907_v54 = vand.u32 2147483647, %v3737_v55 }
 0x15a   :  { %2489 = vrcp.f32 %v3742_v19  ;;  %v3762_v53 = vadd.f32 1.0, %v2482_v43  ;;  %vm1608_vm9 = vweird.f32 %v3729_v51  ;;  %v1147_v62 = vand.u32 2147483647, %v3742_v19 }
 0x15b   :  { %v3756_v21 = vpop.eup %2483  ;;  %2491 = vpow2.f32 %v591_v14  ;;  %v1149_v56 = vand.u32 2147483648, %v3742_v19  ;;  %v1375_v50 = vor.u32 1.1754944e-38, %v1374_v13  ;;  %v3776_v16 = vor.u32 1.1754944e-38, %v1614_v30 }
 0x15c   :  { %v3764_v47 = vpop.eup %2485  ;;  %v1364_v48 = vmul.f32 %v3756_v21, %v3726_v57  ;;  %2493 = vpow2.f32 %v623_v4  ;;  %vm3779_vm10 = vcmp.eq.f32.partialorder %v1372_v11, 8.507059e+37  ;;  %vm903_vm11 = vweird.f32 %v3737_v55 }
 0x15d   :  { %v1604_v60 = vmul.f32 %v3764_v47, %v3729_v51  ;;  %2495 = vrcp.f32 %v3760_v27  ;;  %v910_v3 = vor.u32 1.1754944e-38, %v909_v36  ;;  %vm1143_vm12 = vweird.f32 %v3742_v19 }
 0x15e   :  { %v1365_v39 = vsub.f32 1.0, %v1364_v48  ;;  %2497 = vrcp.f32 %v3762_v53  ;;  %v2488_v24 = vpop.eup %2487  ;;  %vm1369_vm13 = vweird.f32 %v3756_v21  ;;  %vm3788_vm14 = vcmp.eq.f32.partialorder %v907_v54, 8.507059e+37 }
 0x15f   :  { %v1605_v59 = vsub.f32 1.0, %v1604_v60  ;;  %v899_v35 = vmul.f32 %v2488_v24, %v3737_v55  ;;  %v1387_v20 = vand.u32 2147483647, %v3760_v27  ;;  %vm1609_vm15 = vweird.f32 %v3764_v47  ;;  %vm3815_vm5 = vmor %vm1368_vm8, %vm1369_vm13 }
 0x160   :  { %v2490_v10 = vpop.eup %2489  ;;  %v1366_v1 = vmul.f32 %v3756_v21, %v1365_v39  ;;  %vm3795_vm0 = vcmp.eq.f32.partialorder %v1612_v44, 8.507059e+37  ;;  %vm3800_vm1 = vcmp.eq.f32.partialorder %v1147_v62, 8.507059e+37  ;;  %v1150_v37 = vor.u32 1.1754944e-38, %v1149_v56  ;;  %vm3834_vm8 = vmor %vm1608_vm9, %vm1609_vm15  ;;  %v374_v56 = vpop.f32.mrf.mxu0 }
 0x161   :  { %v2492_v32 = vpop.eup %2491  ;;  %v1606_v49 = vmul.f32 %v3764_v47, %v1605_v59  ;;  %v1139_v29 = vmul.f32 %v2490_v10, %v3742_v19  ;;  %v900_v31 = vsub.f32 1.0, %v899_v35  ;;  %vm1383_vm2 = vweird.f32 %v3760_v27 }
 0x162   :  { %v2494_v26 = vpop.eup %2493  ;;  %v1367_v40 = vadd.f32 %v3756_v21, %v1366_v1  ;;  %v1389_v6 = vand.u32 2147483648, %v3760_v27  ;;  %v1627_v9 = vand.u32 2147483647, %v3762_v53  ;;  %vm904_vm3 = vweird.f32 %v2488_v24 }
 0x163   :  { %v2496_v12 = vpop.eup %2495  ;;  %v1607_v61 = vadd.f32 %v3764_v47, %v1606_v49  ;;  %v1140_v23 = vsub.f32 1.0, %v1139_v29  ;;  %vm1623_vm4 = vweird.f32 %v3762_v53  ;;  %v1629_v22 = vand.u32 2147483648, %v3762_v53  ;;  %vm905_vm13 = vmor %vm903_vm11, %vm904_vm3 }
 0x164   :  { %v2498_v5 = vpop.eup %2497  ;;  %v901_v33 = vmul.f32 %v2488_v24, %v900_v31  ;;  %v1379_v4 = vmul.f32 %v2496_v12, %v3760_v27  ;;  %vm3820_vm6 = vcmp.eq.f32.partialorder %v1387_v20, 8.507059e+37  ;;  %v3824_v11 = vadd.f32 1.0, %v2492_v32  ;;  %v414_v20 = vpop.f32.mrf.mxu1 }
 0x165   :  { %v1371_v13 = vsel %vm3815_vm5, %v3756_v21, %v1367_v40  ;;  %v1141_v30 = vmul.f32 %v2490_v10, %v1140_v23  ;;  %vm1144_vm7 = vweird.f32 %v2490_v10  ;;  %v1619_v57 = vmul.f32 %v2498_v5, %v3762_v53  ;;  %v494_v40 = vpop.f32.mrf.mxu3 }
 0x166   :  { %v902_v48 = vadd.f32 %v2488_v24, %v901_v33  ;;  %v1380_v44 = vsub.f32 1.0, %v1379_v4  ;;  %v1390_v54 = vor.u32 1.1754944e-38, %v1389_v6  ;;  %v3838_v60 = vadd.f32 1.0, %v2494_v26  ;;  %vm1145_vm9 = vmor %vm1143_vm12, %vm1144_vm7 }
 0x167   :  { %v1611_v21 = vsel %vm3834_vm8, %v3764_v47, %v1607_v61  ;;  %v1142_v62 = vadd.f32 %v2490_v10, %v1141_v30  ;;  %vm1384_vm5 = vweird.f32 %v2496_v12  ;;  %v1620_v51 = vsub.f32 1.0, %v1619_v57 }
 0x168   :  { %v1376_v39 = vsel %vm3779_vm10, %v1375_v50, %v1371_v13  ;;  %v906_v59 = vsel %vm905_vm13, %v2488_v24, %v902_v48  ;;  %v1381_v1 = vmul.f32 %v2496_v12, %v1380_v44  ;;  %2499 = vrcp.f32 %v3824_v11  ;;  %vm1385_vm10 = vmor %vm1383_vm2, %vm1384_vm5  ;;  %v377_v61 = vpop.f32.mrf.mxu0 }
 0x169   :  { %v911_v47 = vsel %vm3788_vm14, %v910_v3, %v906_v59  ;;  %v1146_v55 = vsel %vm1145_vm9, %v2490_v10, %v1142_v62  ;;  %v1621_v35 = vmul.f32 %v2498_v5, %v1620_v51  ;;  %vm1624_vm11 = vweird.f32 %v2498_v5 }
 0x16a   :  { %v1616_v8 = vsel %vm3795_vm0, %v3776_v16, %v1611_v21  ;;  %v1732_v50 = vmul.f32 %v911_v47, %v3669_v42  ;;  %v1151_v19 = vsel %vm3800_vm1, %v1150_v37, %v1146_v55  ;;  %v1382_v24 = vadd.f32 %v2496_v12, %v1381_v1  ;;  %vm1625_vm14 = vmor %vm1623_vm4, %vm1624_vm11 }
 0x16b   :  { %v1748_v32 = vmul.f32 %v1151_v19, %v3680_v52  ;;  %v1622_v3 = vadd.f32 %v2498_v5, %v1621_v35  ;;  %vm1628_vm12 = vcmp.eq.f32.partialorder %v1627_v9, 8.507059e+37  ;;  %2501 = vrcp.f32 %v3838_v60 }
 0x16c   :  { %v1763_v10 = vmul.f32 %v1376_v39, %v3649_v2  ;;  %v2142_v16 = vpack.c.bf16 %v1732_v50, %v3740_v46  ;;  %v1386_v58 = vsel %vm1385_vm10, %v2496_v12, %v1382_v24  ;;  %v1630_v42 = vor.u32 1.1754944e-38, %v1629_v22  ;;  %v417_v13 = vpop.f32.mrf.mxu1 }
 0x16d   :  { %v1779_v49 = vmul.f32 %v1616_v8, %v3652_v17  ;;  %v2182_v52 = vpack.c.bf16 %v1748_v32, %v3745_v38  ;;  %v1391_v27 = vsel %vm3820_vm6, %v1390_v54, %v1386_v58  ;;  %v1626_v34 = vsel %vm1625_vm14, %v2498_v5, %v1622_v3 }
 0x16e   :  { %v3873_v29 = vpop.eup %2499  ;;  %2282 = vst [vmem:[%s4535_s3 + $0x20] sm:$0xff] %v2142_v16   ;;  %v1764_v2 = vmul.f32 %v1391_v27, %v3686_v63  ;;  %v1631_v46 = vsel %vm1628_vm12, %v1630_v42, %v1626_v34  ;;  %vm918_vm15 = vweird.f32 %v3824_v11  ;;  %v655_v17 = vmul.f32 1.442695, %v549_v15  ;;  %v454_v63 = vpop.f32.mrf.mxu2 }
 0x16f   :  { %2290 = vst [vmem:[%s4535_s3 + $0x60] sm:$0xff] %v2182_v52   ;;  %v1780_v38 = vmul.f32 %v1631_v46, %v3689_v45  ;;  %v914_v53 = vmul.f32 %v3873_v29, %v3824_v11  ;;  %v922_v25 = vand.u32 2147483647, %v3824_v11  ;;  %v924_v37 = vand.u32 2147483648, %v3824_v11 }
 0x170   :  { %v2222_v26 = vpack.c.bf16 %v1764_v2, %v1763_v10  ;;  %vm1158_vm0 = vweird.f32 %v3838_v60  ;;  %2503 = vpow2.f32 %v655_v17  ;;  %v565_v15 = vsub.f32 0.0, %v3750_v28 }
 0x171   :  { %v2502_v31 = vpop.eup %2501  ;;  %v2262_v6 = vpack.c.bf16 %v1780_v38, %v1779_v49  ;;  %v915_v9 = vsub.f32 1.0, %v914_v53  ;;  %v3893_v45 = vadd.f32 %v3398_v0, %v374_v56  ;;  %v3896_v12 = vadd.f32 %v3398_v0, %v414_v20 }
 0x172   :  { %2298 = vst [vmem:[%s4535_s3 + $0xa0] sm:$0xff] %v2222_v26   ;;  %vm919_vm1 = vweird.f32 %v3873_v29  ;;  %v1154_v23 = vmul.f32 %v2502_v31, %v3838_v60  ;;  %v687_v22 = vmul.f32 1.442695, %v565_v15  ;;  %v3904_v5 = vadd.f32 %v3398_v0, %v454_v63  ;;  %v497_v63 = vpop.f32.mrf.mxu3 }
 0x173   :  { %2306 = vst [vmem:[%s4535_s3 + $0xe0] sm:$0xff] %v2262_v6   ;;  %v916_v14 = vmul.f32 %v3873_v29, %v915_v9  ;;  %v518_v33 = vsub.f32 0.0, %v3893_v45  ;;  %v534_v4 = vsub.f32 0.0, %v3896_v12  ;;  %v3913_v43 = vadd.f32 %v3398_v0, %v494_v40  ;;  %vm3931_vm3 = vmor %vm918_vm15, %vm919_vm1 }
 0x174   :  { %v1155_v30 = vsub.f32 1.0, %v1154_v23  ;;  %2505 = vpow2.f32 %v687_v22  ;;  %v550_v57 = vsub.f32 0.0, %v3904_v5  ;;  %v3917_v36 = vadd.f32 %v3398_v0, %v377_v61  ;;  %v3979_v61 = vld [vmem:[%s4533_s2] ss:$0 sm:$0xff] }
 0x175   :  { %v917_v48 = vadd.f32 %v3873_v29, %v916_v14  ;;  %v593_v44 = vmul.f32 1.442695, %v518_v33  ;;  %v625_v54 = vmul.f32 1.442695, %v534_v4  ;;  %v566_v21 = vsub.f32 0.0, %v3913_v43 }
 0x176   :  { %v2504_v62 = vpop.eup %2503  ;;  %v1156_v51 = vmul.f32 %v2502_v31, %v1155_v30  ;;  %v657_v56 = vmul.f32 1.442695, %v550_v57  ;;  %v519_v39 = vsub.f32 0.0, %v3917_v36  ;;  %v3923_v59 = vadd.f32 %v3398_v0, %v417_v13  ;;  %v457_v38 = vpop.f32.mrf.mxu2 }
 0x177   :  { %vm1159_vm2 = vweird.f32 %v2502_v31  ;;  %v3925_v1 = vadd.f32 1.0, %v2504_v62  ;;  %2507 = vpow2.f32 %v593_v44  ;;  %v689_v47 = vmul.f32 1.442695, %v566_v21 }
 0x178   :  { %v1157_v35 = vadd.f32 %v2502_v31, %v1156_v51  ;;  %v1164_v20 = vand.u32 2147483648, %v3838_v60  ;;  %2509 = vpow2.f32 %v625_v54  ;;  %v921_v0 = vsel %vm3931_vm3, %v3873_v29, %v917_v48  ;;  %vm3943_vm4 = vmor %vm1158_vm0, %vm1159_vm2 }
 0x179   :  { %v1162_v8 = vand.u32 2147483647, %v3838_v60  ;;  %2511 = vrcp.f32 %v3925_v1  ;;  %v925_v19 = vor.u32 1.1754944e-38, %v924_v37  ;;  %v595_v24 = vmul.f32 1.442695, %v519_v39 }
 0x17a   :  { %v2506_v50 = vpop.eup %2505  ;;  %2513 = vpow2.f32 %v657_v56  ;;  %v535_v32 = vsub.f32 0.0, %v3923_v59  ;;  %vm923_vm6 = vcmp.eq.f32.partialorder %v922_v25, 8.507059e+37  ;;  %v1161_v3 = vsel %vm3943_vm4, %v2502_v31, %v1157_v35  ;;  %v379_v31 = vpop.f32.mrf.mxu0 }
 0x17b   :  { %v3950_v10 = vadd.f32 1.0, %v2506_v50  ;;  %2515 = vpow2.f32 %v689_v47  ;;  %v926_v16 = vsel %vm923_vm6, %v925_v19, %v921_v0  ;;  %v1165_v58 = vor.u32 1.1754944e-38, %v1164_v20 }
 0x17c   :  { %vm1163_vm7 = vcmp.eq.f32.partialorder %v1162_v8, 8.507059e+37  ;;  %v1404_v60 = vand.u32 2147483648, %v3925_v1  ;;  %v627_v34 = vmul.f32 1.442695, %v535_v32  ;;  %v3959_v2 = vmul.f32 %v926_v16, %v3699_v41 }
 0x17d   :  { %v2508_v42 = vpop.eup %2507  ;;  %2517 = vrcp.f32 %v3950_v10  ;;  %v1166_v52 = vsel %vm1163_vm7, %v1165_v58, %v1161_v3  ;;  %v1644_v46 = vand.u32 2147483648, %v3950_v10  ;;  %vm1398_vm8 = vweird.f32 %v3925_v1 }
 0x17e   :  { %v2510_v49 = vpop.eup %2509  ;;  %v3954_v27 = vadd.f32 1.0, %v2508_v42  ;;  %2519 = vpow2.f32 %v595_v24  ;;  %v1402_v37 = vand.u32 2147483647, %v3925_v1  ;;  %v3970_v41 = vmul.f32 %v1166_v52, %v3703_v18 }
 0x17f   :  { %v3956_v29 = vpop.eup %2511  ;;  %v3962_v17 = vadd.f32 1.0, %v2510_v49  ;;  %v1405_v15 = vor.u32 1.1754944e-38, %v1404_v60  ;;  %v1642_v40 = vand.u32 2147483647, %v3950_v10  ;;  %v3982_v23 = vadd.f32 %v3979_v61, %v457_v38 }
 0x180   :  { %v2514_v53 = vpop.eup %2513  ;;  %v1394_v25 = vmul.f32 %v3956_v29, %v3925_v1  ;;  %2521 = vrcp.f32 %v3954_v27  ;;  %v3986_v22 = vor.u32 1.1754944e-38, %v1644_v46  ;;  %v937_v14 = vand.u32 2147483647, %v3954_v27 }
 0x181   :  { %v2516_v26 = vpop.eup %2515  ;;  %2523 = vrcp.f32 %v3962_v17  ;;  %v3974_v9 = vadd.f32 1.0, %v2514_v53  ;;  %v3992_v4 = vadd.f32 %v3979_v61, %v497_v63  ;;  %vm3995_vm13 = vcmp.eq.f32.partialorder %v1402_v37, 8.507059e+37 }
 0x182   :  { %v1395_v6 = vsub.f32 1.0, %v1394_v25  ;;  %2525 = vpow2.f32 %v627_v34  ;;  %v3989_v33 = vadd.f32 1.0, %v2516_v26  ;;  %vm1638_vm5 = vweird.f32 %v3950_v10 }
 0x183   :  { %v3984_v18 = vpop.eup %2517  ;;  %v939_v44 = vand.u32 2147483648, %v3954_v27  ;;  %v4004_v54 = vadd.f32 %v3979_v61, %v379_v31  ;;  %vm1399_vm9 = vweird.f32 %v3956_v29  ;;  %v1177_v21 = vand.u32 2147483647, %v3962_v17 }
 0x184   :  { %v2520_v13 = vpop.eup %2519  ;;  %v1396_v30 = vmul.f32 %v3956_v29, %v1395_v6  ;;  %v1634_v48 = vmul.f32 %v3984_v18, %v3950_v10  ;;  %v1179_v62 = vand.u32 2147483648, %v3962_v17  ;;  %2527 = vrcp.f32 %v3974_v9  ;;  %vm4028_vm14 = vmor %vm1398_vm8, %vm1399_vm9 }
 0x185   :  { %vm933_vm11 = vweird.f32 %v3954_v27  ;;  %2529 = vrcp.f32 %v3989_v33  ;;  %vm4014_vm10 = vcmp.eq.f32.partialorder %v937_v14, 8.507059e+37  ;;  %vm1173_vm12 = vweird.f32 %v3962_v17 }
 0x186   :  { %v2522_v51 = vpop.eup %2521  ;;  %v1397_v56 = vadd.f32 %v3956_v29, %v1396_v30  ;;  %v1635_v39 = vsub.f32 1.0, %v1634_v48  ;;  %v4019_v20 = vadd.f32 1.0, %v2520_v13  ;;  %v940_v50 = vor.u32 1.1754944e-38, %v939_v44 }
 0x187   :  { %v2524_v47 = vpop.eup %2523  ;;  %v929_v55 = vmul.f32 %v2522_v51, %v3954_v27  ;;  %v1417_v11 = vand.u32 2147483647, %v3974_v9  ;;  %vm1639_vm15 = vweird.f32 %v3984_v18  ;;  %vm4033_vm0 = vcmp.eq.f32.partialorder %v1177_v21, 8.507059e+37 }
 0x188   :  { %v2526_v0 = vpop.eup %2525  ;;  %v1636_v8 = vmul.f32 %v3984_v18, %v1635_v39  ;;  %v1169_v19 = vmul.f32 %v2524_v47, %v3962_v17  ;;  %v1180_v16 = vor.u32 1.1754944e-38, %v1179_v62  ;;  %v1401_v58 = vsel %vm4028_vm14, %v3956_v29, %v1397_v56  ;;  %vm4059_vm7 = vmor %vm1638_vm5, %vm1639_vm15 }
 0x189   :  { %v930_v32 = vsub.f32 1.0, %v929_v55  ;;  %vm4040_vm1 = vcmp.eq.f32.partialorder %v1642_v40, 8.507059e+37  ;;  %vm1413_vm2 = vweird.f32 %v3974_v9  ;;  %v1419_v60 = vand.u32 2147483648, %v3974_v9 }
 0x18a   :  { %v1170_v1 = vsub.f32 1.0, %v1169_v19  ;;  %v2528_v49 = vpop.eup %2527  ;;  %v1637_v52 = vadd.f32 %v3984_v18, %v1636_v8  ;;  %vm934_vm3 = vweird.f32 %v2522_v51  ;;  %2531 = vrcp.f32 %v4019_v20 }
 0x18b   :  { %v931_v34 = vmul.f32 %v2522_v51, %v930_v32  ;;  %v2530_v46 = vpop.eup %2529  ;;  %vm1174_vm4 = vweird.f32 %v2524_v47  ;;  %v1409_v29 = vmul.f32 %v2528_v49, %v3974_v9  ;;  %vm4049_vm6 = vcmp.eq.f32.partialorder %v1417_v11, 8.507059e+37  ;;  %vm935_vm9 = vmor %vm933_vm11, %vm934_vm3  ;;  %v499_v11 = vpop.f32.mrf.mxu3 }
 0x18c   :  { %v1171_v38 = vmul.f32 %v2524_v47, %v1170_v1  ;;  %v1406_v25 = vsel %vm3995_vm13, %v1405_v15, %v1401_v58  ;;  %v1649_v26 = vmul.f32 %v2530_v46, %v3989_v33  ;;  %vm1653_vm8 = vweird.f32 %v3989_v33  ;;  %vm1175_vm13 = vmor %vm1173_vm12, %vm1174_vm4 }
 0x18d   :  { %v932_v63 = vadd.f32 %v2522_v51, %v931_v34  ;;  %v1410_v31 = vsub.f32 1.0, %v1409_v29  ;;  %v1657_v15 = vand.u32 2147483647, %v3989_v33  ;;  %v1659_v6 = vand.u32 2147483648, %v3989_v33 }
 0x18e   :  { %v1172_v40 = vadd.f32 %v2524_v47, %v1171_v38  ;;  %v1641_v10 = vsel %vm4059_vm7, %v3984_v18, %v1637_v52  ;;  %vm1414_vm5 = vweird.f32 %v2528_v49  ;;  %v1650_v13 = vsub.f32 1.0, %v1649_v26  ;;  %v382_v38 = vpop.f32.mrf.mxu0 }
 0x18f   :  { %v936_v14 = vsel %vm935_vm9, %v2522_v51, %v932_v63  ;;  %v1411_v57 = vmul.f32 %v2528_v49, %v1410_v31  ;;  %v4077_v48 = vadd.f32 1.0, %v2526_v0  ;;  %vm1654_vm11 = vweird.f32 %v2530_v46 }
 0x190   :  { %v941_v27 = vsel %vm4014_vm10, %v940_v50, %v936_v14  ;;  %v1176_v30 = vsel %vm1175_vm13, %v2524_v47, %v1172_v40  ;;  %v4079_v44 = vpop.eup %2531  ;;  %v1651_v62 = vmul.f32 %v2530_v46, %v1650_v13  ;;  %v1420_v56 = vor.u32 1.1754944e-38, %v1419_v60  ;;  %v419_v47 = vpop.f32.mrf.mxu1  ;;  %vm1415_vm10 = vmor %vm1413_vm2, %vm1414_vm5 }
 0x191   :  { %v1734_v21 = vmul.f32 %v941_v27, %v3893_v45  ;;  %v1181_v18 = vsel %vm4033_vm0, %v1180_v16, %v1176_v30  ;;  %v1412_v51 = vadd.f32 %v2528_v49, %v1411_v57  ;;  %v944_v39 = vmul.f32 %v4079_v44, %v4019_v20  ;;  %vm1655_vm12 = vmor %vm1653_vm8, %vm1654_vm11 }
 0x192   :  { %v1750_v17 = vmul.f32 %v1181_v18, %v3896_v12  ;;  %v1646_v55 = vsel %vm4040_vm1, %v3986_v22, %v1641_v10  ;;  %v1652_v45 = vadd.f32 %v2530_v46, %v1651_v62  ;;  %2533 = vrcp.f32 %v4077_v48  ;;  %v459_v12 = vpop.f32.mrf.mxu2 }
 0x193   :  { %v2147_v35 = vpack.c.bf16 %v1734_v21, %v3959_v2  ;;  %v1416_v8 = vsel %vm1415_vm10, %v2528_v49, %v1412_v51  ;;  %v1660_v50 = vor.u32 1.1754944e-38, %v1659_v6  ;;  %v945_v19 = vsub.f32 1.0, %v944_v39 }
 0x194   :  { %v2187_v0 = vpack.c.bf16 %v1750_v17, %v3970_v41  ;;  %v1765_v22 = vmul.f32 %v1406_v25, %v3734_v7  ;;  %v1421_v2 = vsel %vm4049_vm6, %v1420_v56, %v1416_v8  ;;  %v1656_v9 = vsel %vm1655_vm12, %v2530_v46, %v1652_v45  ;;  %v502_v56 = vpop.f32.mrf.mxu3 }
 0x195   :  { %2283 = vst [vmem:[%s4535_s3 + $0x28] sm:$0xff] %v2147_v35   ;;  %vm1658_vm14 = vcmp.eq.f32.partialorder %v1657_v15, 8.507059e+37  ;;  %v1766_v41 = vmul.f32 %v1421_v2, %v3904_v5  ;;  %vm948_vm15 = vweird.f32 %v4019_v20  ;;  %v551_v7 = vsub.f32 0.0, %v3982_v23 }
 0x196   :  { %2291 = vst [vmem:[%s4535_s3 + $0x68] sm:$0xff] %v2187_v0   ;;  %v1661_v33 = vsel %vm1658_vm14, %v1660_v50, %v1656_v9  ;;  %v1781_v24 = vmul.f32 %v1646_v55, %v3750_v28  ;;  %v946_v3 = vmul.f32 %v4079_v44, %v945_v19  ;;  %v567_v16 = vsub.f32 0.0, %v3992_v4 }
 0x197   :  { %v1782_v32 = vmul.f32 %v1661_v33, %v3913_v43  ;;  %v2227_v58 = vpack.c.bf16 %v1766_v41, %v1765_v22  ;;  %v952_v42 = vand.u32 2147483647, %v4019_v20  ;;  %v659_v1 = vmul.f32 1.442695, %v551_v7 }
 0x198   :  { %v520_v5 = vsub.f32 0.0, %v4004_v54  ;;  %v2534_v60 = vpop.eup %2533  ;;  %v691_v52 = vmul.f32 1.442695, %v567_v16  ;;  %v4117_v34 = vadd.f32 %v3979_v61, %v419_v47  ;;  %v4120_v28 = vadd.f32 %v3979_v61, %v459_v12  ;;  %v422_v40 = vpop.f32.mrf.mxu1 }
 0x199   :  { %v2267_v49 = vpack.c.bf16 %v1782_v32, %v1781_v24  ;;  %2299 = vst [vmem:[%s4535_s3 + $0xa8] sm:$0xff] %v2227_v58   ;;  %vm949_vm0 = vweird.f32 %v4079_v44  ;;  %v954_v43 = vand.u32 2147483648, %v4019_v20  ;;  %v1184_v46 = vmul.f32 %v2534_v60, %v4077_v48 }
 0x19a   :  { %2535 = vpow2.f32 %v659_v1  ;;  %v947_v29 = vadd.f32 %v4079_v44, %v946_v3  ;;  %v597_v53 = vmul.f32 1.442695, %v520_v5  ;;  %v536_v25 = vsub.f32 0.0, %v4117_v34  ;;  %v462_v10 = vpop.f32.mrf.mxu2  ;;  %vm4146_vm2 = vmor %vm948_vm15, %vm949_vm0 }
 0x19b   :  { %2307 = vst [vmem:[%s4535_s3 + $0xe8] sm:$0xff] %v2267_v49   ;;  %2537 = vpow2.f32 %v691_v52  ;;  %v1185_v37 = vsub.f32 1.0, %v1184_v46  ;;  %vm1188_vm1 = vweird.f32 %v4077_v48  ;;  %v552_v63 = vsub.f32 0.0, %v4120_v28 }
 0x19c   :  { %v4136_v26 = vadd.f32 %v3979_v61, %v499_v11  ;;  %v1194_v31 = vand.u32 2147483648, %v4077_v48  ;;  %2539 = vpow2.f32 %v597_v53  ;;  %v629_v15 = vmul.f32 1.442695, %v536_v25 }
 0x19d   :  { %v4140_v6 = vadd.f32 %v3979_v61, %v382_v38  ;;  %v1186_v13 = vmul.f32 %v2534_v60, %v1185_v37  ;;  %vm1189_vm3 = vweird.f32 %v2534_v60  ;;  %v661_v27 = vmul.f32 1.442695, %v552_v63 }
 0x19e   :  { %v568_v30 = vsub.f32 0.0, %v4136_v26  ;;  %v951_v57 = vsel %vm4146_vm2, %v4079_v44, %v947_v29  ;;  %v1192_v21 = vand.u32 2147483647, %v4077_v48  ;;  %2541 = vpow2.f32 %v629_v15  ;;  %vm4164_vm6 = vmor %vm1188_vm1, %vm1189_vm3 }
 0x19f   :  { %v4156_v18 = vadd.f32 %v3979_v61, %v422_v40  ;;  %v1187_v62 = vadd.f32 %v2534_v60, %v1186_v13  ;;  %2543 = vpow2.f32 %v661_v27  ;;  %v4159_v51 = vadd.f32 %v3979_v61, %v462_v10 }
 0x1a0   :  { %v2536_v20 = vpop.eup %2535  ;;  %v693_v17 = vmul.f32 1.442695, %v568_v30  ;;  %vm953_vm4 = vcmp.eq.f32.partialorder %v952_v42, 8.507059e+37  ;;  %v955_v47 = vor.u32 1.1754944e-38, %v954_v43  ;;  %v521_v35 = vsub.f32 0.0, %v4140_v6 }
 0x1a1   :  { %v2538_v39 = vpop.eup %2537  ;;  %v4168_v55 = vadd.f32 1.0, %v2536_v20  ;;  %v1191_v45 = vsel %vm4164_vm6, %v2534_v60, %v1187_v62  ;;  %v1195_v12 = vor.u32 1.1754944e-38, %v1194_v31  ;;  %v537_v48 = vsub.f32 0.0, %v4156_v18 }
 0x1a2   :  { %v4173_v0 = vadd.f32 1.0, %v2538_v39  ;;  %2545 = vpow2.f32 %v693_v17  ;;  %v2540_v8 = vpop.eup %2539  ;;  %v956_v50 = vsel %vm953_vm4, %v955_v47, %v951_v57  ;;  %v4178_v19 = vadd.f32 %v3979_v61, %v502_v56  ;;  %v424_v56 = vpop.f32.mrf.mxu1 }
 0x1a3   :  { %2547 = vrcp.f32 %v4168_v55  ;;  %vm1193_vm7 = vcmp.eq.f32.partialorder %v1192_v21, 8.507059e+37  ;;  %v553_v22 = vsub.f32 0.0, %v4159_v51  ;;  %v4182_v41 = vadd.f32 1.0, %v2540_v8 }
 0x1a4   :  { %2549 = vrcp.f32 %v4173_v0  ;;  %v2542_v2 = vpop.eup %2541  ;;  %v1196_v9 = vsel %vm1193_vm7, %v1195_v12, %v1191_v45  ;;  %v599_v33 = vmul.f32 1.442695, %v521_v35  ;;  %v4185_v11 = vmul.f32 %v956_v50, %v3917_v36 }
 0x1a5   :  { %v2544_v7 = vpop.eup %2543  ;;  %v1434_v24 = vand.u32 2147483648, %v4168_v55  ;;  %v4188_v32 = vadd.f32 1.0, %v2542_v2  ;;  %v1674_v3 = vand.u32 2147483648, %v4173_v0  ;;  %2551 = vrcp.f32 %v4182_v41 }
 0x1a6   :  { %v631_v16 = vmul.f32 1.442695, %v537_v48  ;;  %v569_v58 = vsub.f32 0.0, %v4178_v19  ;;  %v4194_v1 = vmul.f32 %v1196_v9, %v3923_v59  ;;  %v1432_v5 = vand.u32 2147483647, %v4168_v55 }
 0x1a7   :  { %2553 = vrcp.f32 %v4188_v32  ;;  %v4198_v36 = vmul.f32 1.442695, %v553_v22  ;;  %v1672_v49 = vand.u32 2147483647, %v4173_v0  ;;  %v4203_v52 = vadd.f32 1.0, %v2544_v7 }
 0x1a8   :  { %v2546_v42 = vpop.eup %2545  ;;  %2555 = vpow2.f32 %v599_v33  ;;  %vm1428_vm8 = vweird.f32 %v4168_v55  ;;  %v4212_v38 = vor.u32 1.1754944e-38, %v1434_v24  ;;  %v967_v29 = vand.u32 2147483647, %v4182_v41 }
 0x1a9   :  { %v4200_v60 = vpop.eup %2547  ;;  %v4205_v43 = vadd.f32 1.0, %v2546_v42  ;;  %v969_v53 = vand.u32 2147483648, %v4182_v41  ;;  %vm1668_vm9 = vweird.f32 %v4173_v0  ;;  %v4219_v37 = vor.u32 1.1754944e-38, %v1674_v3 }
 0x1aa   :  { %v4207_v46 = vpop.eup %2549  ;;  %v1424_v59 = vmul.f32 %v4200_v60, %v4168_v55  ;;  %v1207_v63 = vand.u32 2147483647, %v4188_v32  ;;  %v4222_v40 = vmul.f32 1.442695, %v569_v58  ;;  %vm963_vm13 = vweird.f32 %v4182_v41 }
 0x1ab   :  { %v1664_v25 = vmul.f32 %v4207_v46, %v4173_v0  ;;  %v1209_v15 = vand.u32 2147483648, %v4188_v32  ;;  %2557 = vrcp.f32 %v4203_v52  ;;  %v2552_v10 = vpop.eup %2551  ;;  %vm1429_vm5 = vweird.f32 %v4200_v60 }
 0x1ac   :  { %v1425_v31 = vsub.f32 1.0, %v1424_v59  ;;  %vm1203_vm11 = vweird.f32 %v4188_v32  ;;  %2559 = vrcp.f32 %v4205_v43  ;;  %v959_v30 = vmul.f32 %v2552_v10, %v4182_v41  ;;  %vm4262_vm3 = vmor %vm1428_vm8, %vm1429_vm5 }
 0x1ad   :  { %v1665_v14 = vsub.f32 1.0, %v1664_v25  ;;  %v2554_v13 = vpop.eup %2553  ;;  %vm4232_vm10 = vcmp.eq.f32.partialorder %v967_v29, 8.507059e+37  ;;  %v970_v21 = vor.u32 1.1754944e-38, %v969_v53  ;;  %vm1669_vm12 = vweird.f32 %v4207_v46 }
 0x1ae   :  { %v1426_v27 = vmul.f32 %v4200_v60, %v1425_v31  ;;  %v2556_v20 = vpop.eup %2555  ;;  %v1199_v17 = vmul.f32 %v2554_v13, %v4188_v32  ;;  %vm4239_vm14 = vcmp.eq.f32.partialorder %v1207_v63, 8.507059e+37  ;;  %v960_v39 = vsub.f32 1.0, %v959_v30  ;;  %vm4272_vm7 = vmor %vm1668_vm9, %vm1669_vm12 }
 0x1af   :  { %v1666_v62 = vmul.f32 %v4207_v46, %v1665_v14  ;;  %v1210_v47 = vor.u32 1.1754944e-38, %v1209_v15  ;;  %v1447_v44 = vand.u32 2147483647, %v4203_v52  ;;  %v1449_v35 = vand.u32 2147483648, %v4203_v52 }
 0x1b0   :  { %v1427_v45 = vadd.f32 %v4200_v60, %v1426_v27  ;;  %vm4246_vm15 = vcmp.eq.f32.partialorder %v1432_v5, 8.507059e+37  ;;  %vm4250_vm0 = vcmp.eq.f32.partialorder %v1672_v49, 8.507059e+37  ;;  %v1200_v50 = vsub.f32 1.0, %v1199_v17 }
 0x1b1   :  { %2561 = vpow2.f32 %v631_v16  ;;  %v2558_v48 = vpop.eup %2557  ;;  %v1667_v22 = vadd.f32 %v4207_v46, %v1666_v62  ;;  %v961_v2 = vmul.f32 %v2552_v10, %v960_v39  ;;  %vm964_vm2 = vweird.f32 %v2552_v10  ;;  %v464_v39 = vpop.f32.mrf.mxu2 }
 0x1b2   :  { %v4256_v9 = vadd.f32 1.0, %v2556_v20  ;;  %v2560_v33 = vpop.eup %2559  ;;  %v1201_v24 = vmul.f32 %v2554_v13, %v1200_v50  ;;  %vm1204_vm4 = vweird.f32 %v2554_v13  ;;  %v1439_v3 = vmul.f32 %v2558_v48, %v4203_v52  ;;  %vm965_vm8 = vmor %vm963_vm13, %vm964_vm2 }
 0x1b3   :  { %vm1683_vm6 = vweird.f32 %v4205_v43  ;;  %v962_v58 = vadd.f32 %v2552_v10, %v961_v2  ;;  %vm4276_vm1 = vcmp.eq.f32.partialorder %v1447_v44, 8.507059e+37  ;;  %v1450_v42 = vor.u32 1.1754944e-38, %v1449_v35  ;;  %vm1205_vm9 = vmor %vm1203_vm11, %vm1204_vm4 }
 0x1b4   :  { %v1687_v5 = vand.u32 2147483647, %v4205_v43  ;;  %v1431_v49 = vsel %vm4262_vm3, %v4200_v60, %v1427_v45  ;;  %v1202_v0 = vadd.f32 %v2554_v13, %v1201_v24  ;;  %v1440_v59 = vsub.f32 1.0, %v1439_v3 }
 0x1b5   :  { %v1679_v29 = vmul.f32 %v2560_v33, %v4205_v43  ;;  %v1671_v53 = vsel %vm4272_vm7, %v4207_v46, %v1667_v22  ;;  %v966_v25 = vsel %vm965_vm8, %v2552_v10, %v962_v58  ;;  %vm1444_vm5 = vweird.f32 %v2558_v48 }
 0x1b6   :  { %2563 = vrcp.f32 %v4256_v9  ;;  %v971_v41 = vsel %vm4232_vm10, %v970_v21, %v966_v25  ;;  %v1206_v63 = vsel %vm1205_vm9, %v2554_v13, %v1202_v0  ;;  %v1441_v31 = vmul.f32 %v2558_v48, %v1440_v59 }
 0x1b7   :  { %v2562_v60 = vpop.eup %2561  ;;  %v1680_v15 = vsub.f32 1.0, %v1679_v29  ;;  %v1736_v14 = vmul.f32 %v971_v41, %v4004_v54  ;;  %v1211_v46 = vsel %vm4239_vm14, %v1210_v47, %v1206_v63  ;;  %vm1684_vm13 = vweird.f32 %v2560_v33 }
 0x1b8   :  { %v1689_v10 = vand.u32 2147483648, %v4205_v43  ;;  %v1752_v32 = vmul.f32 %v1211_v46, %v4117_v34  ;;  %v1442_v27 = vadd.f32 %v2558_v48, %v1441_v31  ;;  %v4301_v20 = vadd.f32 1.0, %v2562_v60  ;;  %vm1685_vm12 = vmor %vm1683_vm6, %vm1684_vm13 }
 0x1b9   :  { %v1681_v30 = vmul.f32 %v2560_v33, %v1680_v15  ;;  %v1436_v13 = vsel %vm4246_vm15, %v4212_v38, %v1431_v49  ;;  %v1676_v54 = vsel %vm4250_vm0, %v4219_v37, %v1671_v53  ;;  %v2152_v57 = vpack.c.bf16 %v1736_v14, %v4185_v11 }
 0x1ba   :  { %vm4672_vm11 = vweird.f32 %v4203_v52  ;;  %2565 = vpow2.f32 %v4198_v36  ;;  %v2192_v34 = vpack.c.bf16 %v1752_v32, %v4194_v1  ;;  %v1690_v36 = vor.u32 1.1754944e-38, %v1689_v10  ;;  %v384_v52 = vpop.f32.mrf.mxu0 }
 0x1bb   :  { %vm1445_vm10 = vmor %vm4672_vm11, %vm1444_vm5  ;;  %v1682_v62 = vadd.f32 %v2560_v33, %v1681_v30  ;;  %2567 = vrcp.f32 %v4301_v20  ;;  %2284 = vst [vmem:[%s4535_s3 + $0x30] sm:$0xff] %v2152_v57   ;;  %v1767_v1 = vmul.f32 %v1436_v13, %v3982_v23  ;;  %vm1688_vm14 = vcmp.eq.f32.partialorder %v1687_v5, 8.507059e+37 }
 0x1bc   :  { %v1446_v21 = vsel %vm1445_vm10, %v2558_v48, %v1442_v27  ;;  %v4316_v17 = vpop.eup %2563  ;;  %2292 = vst [vmem:[%s4535_s3 + $0x70] sm:$0xff] %v2192_v34   ;;  %v1783_v47 = vmul.f32 %v1676_v54, %v3992_v4  ;;  %2569 = vpow2.f32 %v4222_v40  ;;  %v4337_v45 = vadd.f32 %v3979_v61, %v384_v52  ;;  %v504_v48 = vpop.f32.mrf.mxu3 }
 0x1bd   :  { %v1451_v11 = vsel %vm4276_vm1, %v1450_v42, %v1446_v21  ;;  %v1686_v37 = vsel %vm1685_vm12, %v2560_v33, %v1682_v62  ;;  %v974_v23 = vmul.f32 %v4316_v17, %v4256_v9  ;;  %v4343_v8 = vadd.f32 %v3979_v61, %v464_v39 }
 0x1be   :  { %v1768_v38 = vmul.f32 %v1451_v11, %v4120_v28  ;;  %v1691_v44 = vsel %vm1688_vm14, %v1690_v36, %v1686_v37  ;;  %v4340_v28 = vadd.f32 %v3979_v61, %v424_v56  ;;  %v522_v50 = vsub.f32 0.0, %v4337_v45 }
 0x1bf   :  { %v1784_v35 = vmul.f32 %v1691_v44, %v4136_v26  ;;  %v554_v2 = vsub.f32 0.0, %v4343_v8  ;;  %v975_v33 = vsub.f32 1.0, %v974_v23  ;;  %v4362_v58 = vadd.f32 %v3979_v61, %v504_v48 }
 0x1c0   :  { %v2232_v43 = vpack.c.bf16 %v1768_v38, %v1767_v1  ;;  %v2566_v12 = vpop.eup %2565  ;;  %v538_v22 = vsub.f32 0.0, %v4340_v28  ;;  %v601_v3 = vmul.f32 1.442695, %v522_v50  ;;  %v984_v29 = vand.u32 2147483648, %v4256_v9 }
 0x1c1   :  { %v4345_v4 = vpop.eup %2567  ;;  %v2272_v26 = vpack.c.bf16 %v1784_v35, %v1783_v47  ;;  %v4350_v40 = vadd.f32 1.0, %v2566_v12  ;;  %v665_v42 = vmul.f32 1.442695, %v554_v2  ;;  %v976_v5 = vmul.f32 %v4316_v17, %v975_v33 }
 0x1c2   :  { %2300 = vst [vmem:[%s4535_s3 + $0xb0] sm:$0xff] %v2232_v43   ;;  %v2570_v7 = vpop.eup %2569  ;;  %v1214_v24 = vmul.f32 %v4345_v4, %v4301_v20  ;;  %v633_v16 = vmul.f32 1.442695, %v538_v22  ;;  %v570_v0 = vsub.f32 0.0, %v4362_v58  ;;  %vm978_vm15 = vweird.f32 %v4256_v9 }
 0x1c3   :  { %2308 = vst [vmem:[%s4535_s3 + $0xf0] sm:$0xff] %v2272_v26   ;;  %2571 = vrcp.f32 %v4350_v40  ;;  %v4364_v55 = vadd.f32 1.0, %v2570_v7  ;;  %v977_v53 = vadd.f32 %v4316_v17, %v976_v5  ;;  %vm979_vm0 = vweird.f32 %v4316_v17 }
 0x1c4   :  { %2573 = vpow2.f32 %v601_v3  ;;  %v1215_v49 = vsub.f32 1.0, %v1214_v24  ;;  %v697_v25 = vmul.f32 1.442695, %v570_v0  ;;  %v982_v15 = vand.u32 2147483647, %v4256_v9  ;;  %vm4383_vm1 = vmor %vm978_vm15, %vm979_vm0 }
 0x1c5   :  { %2575 = vrcp.f32 %v4364_v55  ;;  %v985_v14 = vor.u32 1.1754944e-38, %v984_v29  ;;  %vm1218_vm2 = vweird.f32 %v4301_v20  ;;  %vm1219_vm3 = vweird.f32 %v4345_v4 }
 0x1c6   :  { %2577 = vpow2.f32 %v633_v16  ;;  %v1216_v41 = vmul.f32 %v4345_v4, %v1215_v49  ;;  %v1222_v27 = vand.u32 2147483647, %v4301_v20  ;;  %v1224_v30 = vand.u32 2147483648, %v4301_v20  ;;  %vm4414_vm7 = vmor %vm1218_vm2, %vm1219_vm3 }
 0x1c7   :  { %2579 = vpow2.f32 %v665_v42  ;;  %v981_v9 = vsel %vm4383_vm1, %v4316_v17, %v977_v53  ;;  %v1462_v54 = vand.u32 2147483647, %v4350_v40  ;;  %vm983_vm4 = vcmp.eq.f32.partialorder %v982_v15, 8.507059e+37 }
 0x1c8   :  { %2581 = vpow2.f32 %v697_v25  ;;  %v1217_v34 = vadd.f32 %v4345_v4, %v1216_v41  ;;  %v1464_v36 = vand.u32 2147483648, %v4350_v40  ;;  %v986_v52 = vsel %vm983_vm4, %v985_v14, %v981_v9 }
 0x1c9   :  { %v4369_v59 = vpop.eup %2571  ;;  %vm4405_vm6 = vcmp.eq.f32.partialorder %v1222_v27, 8.507059e+37  ;;  %v1225_v1 = vor.u32 1.1754944e-38, %v1224_v30  ;;  %vm1458_vm8 = vweird.f32 %v4350_v40  ;;  %vm4419_vm9 = vcmp.eq.f32.partialorder %v1462_v54, 8.507059e+37 }
 0x1ca   :  { %v1454_v61 = vmul.f32 %v4369_v59, %v4350_v40  ;;  %v2574_v60 = vpop.eup %2573  ;;  %v1221_v47 = vsel %vm4414_vm7, %v4345_v4, %v1217_v34  ;;  %vm1459_vm5 = vweird.f32 %v4369_v59  ;;  %v4431_v35 = vmul.f32 %v986_v52, %v4140_v6 }
 0x1cb   :  { %v4378_v31 = vpop.eup %2575  ;;  %v4381_v46 = vadd.f32 1.0, %v2574_v60  ;;  %v1465_v23 = vor.u32 1.1754944e-38, %v1464_v36  ;;  %vm1698_vm13 = vweird.f32 %v4364_v55  ;;  %v1702_v50 = vand.u32 2147483647, %v4364_v55  ;;  %vm4444_vm11 = vmor %vm1458_vm8, %vm1459_vm5 }
 0x1cc   :  { %v1455_v63 = vsub.f32 1.0, %v1454_v61  ;;  %v2578_v10 = vpop.eup %2577  ;;  %v1694_v57 = vmul.f32 %v4378_v31, %v4364_v55  ;;  %v1704_v4 = vand.u32 2147483648, %v4364_v55  ;;  %v1226_v22 = vsel %vm4405_vm6, %v1225_v1, %v1221_v47 }
 0x1cd   :  { %v2580_v13 = vpop.eup %2579  ;;  %2583 = vrcp.f32 %v4381_v46  ;;  %v4400_v62 = vadd.f32 1.0, %v2578_v10  ;;  %v997_v20 = vand.u32 2147483647, %v4381_v46  ;;  %v999_v12 = vand.u32 2147483648, %v4381_v46 }
 0x1ce   :  { %v1456_v21 = vmul.f32 %v4369_v59, %v1455_v63  ;;  %v4402_v11 = vadd.f32 1.0, %v2580_v13  ;;  %v2582_v38 = vpop.eup %2581  ;;  %v1695_v39 = vsub.f32 1.0, %v1694_v57  ;;  %vm1699_vm10 = vweird.f32 %v4378_v31 }
 0x1cf   :  { %2585 = vrcp.f32 %v4400_v62  ;;  %v4434_v26 = vadd.f32 1.0, %v2582_v38  ;;  %vm993_vm12 = vweird.f32 %v4381_v46  ;;  %vm4455_vm14 = vcmp.eq.f32.partialorder %v997_v20, 8.507059e+37  ;;  %vm4484_vm7 = vmor %vm1698_vm13, %vm1699_vm10 }
 0x1d0   :  { %2587 = vrcp.f32 %v4402_v11  ;;  %v1457_v44 = vadd.f32 %v4369_v59, %v1456_v21  ;;  %v1696_v2 = vmul.f32 %v4378_v31, %v1695_v39  ;;  %v1000_v16 = vor.u32 1.1754944e-38, %v999_v12 }
 0x1d1   :  { %2589 = vrcp.f32 %v4434_v26  ;;  %v1237_v5 = vand.u32 2147483647, %v4400_v62  ;;  %v1239_v49 = vand.u32 2147483648, %v4400_v62  ;;  %vm1233_vm0 = vweird.f32 %v4400_v62 }
 0x1d2   :  { %v1461_v7 = vsel %vm4444_vm11, %v4369_v59, %v1457_v44  ;;  %v1697_v61 = vadd.f32 %v4378_v31, %v1696_v2  ;;  %v1477_v25 = vand.u32 2147483647, %v4402_v11  ;;  %vm4468_vm1 = vcmp.eq.f32.partialorder %v1702_v50, 8.507059e+37 }
 0x1d3   :  { %v2584_v43 = vpop.eup %2583  ;;  %v1466_v29 = vsel %vm4419_vm9, %v1465_v23, %v1461_v7  ;;  %vm1473_vm2 = vweird.f32 %v4402_v11  ;;  %v1479_v15 = vand.u32 2147483648, %v4402_v11  ;;  %vm4476_vm6 = vcmp.eq.f32.partialorder %v1237_v5, 8.507059e+37 }
 0x1d4   :  { %v989_v48 = vmul.f32 %v2584_v43, %v4381_v46  ;;  %vm994_vm15 = vweird.f32 %v2584_v43  ;;  %v1240_v27 = vor.u32 1.1754944e-38, %v1239_v49  ;;  %v1701_v54 = vsel %vm4484_vm7, %v4378_v31, %v1697_v61 }
 0x1d5   :  { %v2586_v33 = vpop.eup %2585  ;;  %vm995_vm3 = vmor %vm993_vm12, %vm994_vm15  ;;  %vm4494_vm9 = vcmp.eq.f32.partialorder %v1477_v25, 8.507059e+37  ;;  %v1480_v52 = vor.u32 1.1754944e-38, %v1479_v15  ;;  %v1717_v31 = vand.u32 2147483647, %v4434_v26  ;;  %v1719_v38 = vand.u32 2147483648, %v4434_v26 }
 0x1d6   :  { %v990_v24 = vsub.f32 1.0, %v989_v48  ;;  %v2588_v3 = vpop.eup %2587  ;;  %v1229_v42 = vmul.f32 %v2586_v33, %v4400_v62  ;;  %vm1234_vm4 = vweird.f32 %v2586_v33  ;;  %v1753_v39 = vmul.f32 %v1226_v22, %v4156_v18 }
 0x1d7   :  { %v1469_v59 = vmul.f32 %v2588_v3, %v4402_v11  ;;  %v2590_v14 = vpop.eup %2589  ;;  %vm1474_vm8 = vweird.f32 %v2588_v3  ;;  %vm1235_vm5 = vmor %vm1233_vm0, %vm1234_vm4  ;;  %v1705_v47 = vor.u32 1.1754944e-38, %v1704_v4  ;;  %v1769_v20 = vmul.f32 %v1466_v29, %v4159_v51 }
 0x1d8   :  { %v991_v0 = vmul.f32 %v2584_v43, %v990_v24  ;;  %v1230_v53 = vsub.f32 1.0, %v1229_v42  ;;  %v1709_v46 = vmul.f32 %v2590_v14, %v4434_v26  ;;  %vm1475_vm13 = vmor %vm1473_vm2, %vm1474_vm8  ;;  %vm1714_vm11 = vweird.f32 %v2590_v14 }
 0x1d9   :  { %v1470_v63 = vsub.f32 1.0, %v1469_v59  ;;  %vm1713_vm10 = vweird.f32 %v4434_v26  ;;  %v1706_v18 = vsel %vm4468_vm1, %v1705_v47, %v1701_v54 }
 0x1da   :  { %v992_v41 = vadd.f32 %v2584_v43, %v991_v0  ;;  %v1231_v10 = vmul.f32 %v2586_v33, %v1230_v53  ;;  %v1710_v17 = vsub.f32 1.0, %v1709_v46  ;;  %vm1715_vm12 = vmor %vm1713_vm10, %vm1714_vm11 }
 0x1db   :  { %v1471_v9 = vmul.f32 %v2588_v3, %v1470_v63 }
 0x1dc   :  { %v996_v13 = vsel %vm995_vm3, %v2584_v43, %v992_v41  ;;  %v1232_v34 = vadd.f32 %v2586_v33, %v1231_v10  ;;  %v1711_v62 = vmul.f32 %v2590_v14, %v1710_v17 }
 0x1dd   :  { %v1001_v57 = vsel %vm4455_vm14, %v1000_v16, %v996_v13  ;;  %v1472_v36 = vadd.f32 %v2588_v3, %v1471_v9  ;;  %vm1718_vm14 = vcmp.eq.f32.partialorder %v1717_v31, 8.507059e+37 }
 0x1de   :  { %v1738_v55 = vmul.f32 %v1001_v57, %v4337_v45  ;;  %v1236_v1 = vsel %vm1235_vm5, %v2586_v33, %v1232_v34 }
 0x1df   :  { %v1241_v45 = vsel %vm4476_vm6, %v1240_v27, %v1236_v1  ;;  %v1476_v56 = vsel %vm1475_vm13, %v2588_v3, %v1472_v36 }
 0x1e0   :  { %v2157_v37 = vpack.c.bf16 %v1738_v55, %v4431_v35  ;;  %v1754_v44 = vmul.f32 %v1241_v45, %v4340_v28  ;;  %v1481_v11 = vsel %vm4494_vm9, %v1480_v52, %v1476_v56  ;;  %v1712_v35 = vadd.f32 %v2590_v14, %v1711_v62 }
 0x1e1   :  { %v1770_v43 = vmul.f32 %v1481_v11, %v4343_v8  ;;  %v1720_v28 = vor.u32 1.1754944e-38, %v1719_v38  ;;  %v1785_v8 = vmul.f32 %v1706_v18, %v4178_v19 }
 0x1e2   :  { %2285 = vst [vmem:[%s4535_s3 + $0x38] sm:$0xff] %v2157_v37   ;;  %v2197_v23 = vpack.c.bf16 %v1754_v44, %v1753_v39  ;;  %v1716_v50 = vsel %vm1715_vm12, %v2590_v14, %v1712_v35 }
 0x1e3   :  { %v2237_v12 = vpack.c.bf16 %v1770_v43, %v1769_v20  ;;  %v1721_v51 = vsel %vm1718_vm14, %v1720_v28, %v1716_v50 }
 0x1e4   :  { %2293 = vst [vmem:[%s4535_s3 + $0x78] sm:$0xff] %v2197_v23   ;;  %v1786_v26 = vmul.f32 %v1721_v51, %v4362_v58 }
 0x1e5   :  { %2301 = vst [vmem:[%s4535_s3 + $0xb8] sm:$0xff] %v2237_v12  }
 0x1e6   :  { %v2277_v4 = vpack.c.bf16 %v1786_v26, %v1785_v8 }
 0x1e8   :  { %2309 = vst [vmem:[%s4535_s3 + $0xf8] sm:$0xff] %v2277_v4  }

</bundles_post_ra>
